<compile_context>
chip_gen: v7x
topology: tpu7x:2x2x1
jax: 0.10.0
libtpu: 0.0.40
codegen_flags: <defaults>
</compile_context>

<pallas_src>
import jax
import jax.numpy as jnp
from jax.experimental import pallas as pl
from jax.experimental.pallas import tpu as pltpu

# ---------------- problem sizes (small, synthetic) ----------------
B = 32           # batch (threads * agents)
OBS_DIM = 32     # flat observation dim  -> MLPBase (1-D obs space)
HIDDEN = 64      # args.hidden_size
ACT_DIM = 8      # Discrete(n) action space
RECURRENT_N = 1  # args.recurrent_N
EPS = 1e-5       # nn.LayerNorm default eps

LANES = 128                   # every feature axis padded to one full lane dim
AVAIL_OFF = OBS_DIM           # available_actions lanes inside the data slab
MASK_OFF = OBS_DIM + ACT_DIM  # masks lane inside the data slab
assert MASK_OFF < LANES

ACT_LANE = HIDDEN             # lane of hout slab carrying the chosen action
LOGP_LANE = HIDDEN + 1        # lane of hout slab carrying the action log-prob

# ---- weight-slab column layout (one bf16 (LANES, NWCOL) slab) ----
W1_COL = 0                       # obs -> hidden
W2_COL = LANES                   # hidden -> hidden
WA_COL = 2 * LANES               # hidden -> action logits (at the avail lanes)
WIH_COL = 3 * LANES              # fused GRU input gates  r|z|n  (3*LANES wide)
WHH_COL = WIH_COL + 3 * LANES    # fused GRU hidden gates r|z|n  (3*LANES wide)
NWCOL = WHH_COL + 3 * LANES      # = 1152

# ---- vector-slab rows (one f32 (NV, VCOL) slab) ----
(IV_FNG, IV_FNB, IV_B1, IV_G1, IV_BE1, IV_B2, IV_G2, IV_BE2,
 IV_GG, IV_BG, IV_BA, IV_BIH, IV_BHH) = range(13)
NV = 13
VCOL = 3 * LANES                 # fused GRU bias rows are 384 wide


def _masked_layernorm(x, lane_mask, count, gamma, beta):
    """LayerNorm over the `count` lanes selected by lane_mask.
    gamma/beta are zero outside the valid lanes, so padded lanes come out 0."""
    xm = jnp.where(lane_mask, x, 0.0)
    mu = jnp.sum(xm, axis=-1, keepdims=True) * (1.0 / count)
    d = jnp.where(lane_mask, xm - mu, 0.0)
    var = jnp.sum(d * d, axis=-1, keepdims=True) * (1.0 / count)
    return d * jax.lax.rsqrt(var + EPS) * gamma + beta


def r_actor_kernel(data_ref, h_ref, w_ref, v_ref, out_ref):
    tb = data_ref.shape[0]
    lane = jax.lax.broadcasted_iota(jnp.int32, (tb, LANES), 1)
    obs_lanes = lane < OBS_DIM
    hid_lanes = lane < HIDDEN
    act_lanes = (lane >= AVAIL_OFF) & (lane < AVAIL_OFF + ACT_DIM)

    def vrow(i):                          # (1, LANES) f32 row of the vector slab
        return v_ref[i:i + 1, 0:LANES]

    def vrow_full(i):                     # (1, VCOL) row (fused GRU biases)
        return v_ref[i:i + 1, :]

    def wcols(c, width):                  # (LANES, width) bf16 weight block
        return w_ref[:, c:c + width]

    def mm(x_bf16, col, width):           # bf16 MXU matmul, f32 accumulate
        return jnp.dot(x_bf16, wcols(col, width),
                       preferred_element_type=jnp.float32)

    data = data_ref[...]

    # ---- MLPBase: feature_norm + 2 x (Linear -> ReLU -> LayerNorm) ----
    x = _masked_layernorm(data, obs_lanes, OBS_DIM, vrow(IV_FNG), vrow(IV_FNB))
    x = jnp.maximum(mm(x.astype(jnp.bfloat16), W1_COL, LANES) + vrow(IV_B1), 0.0)
    x = _masked_layernorm(x, hid_lanes, HIDDEN, vrow(IV_G1), vrow(IV_BE1))
    x = jnp.maximum(mm(x.astype(jnp.bfloat16), W2_COL, LANES) + vrow(IV_B2), 0.0)
    x = _masked_layernorm(x, hid_lanes, HIDDEN, vrow(IV_G2), vrow(IV_BE2))

    # ---- RNNLayer: mask reset + single GRU step (PyTorch gate order r,z,n) ----
    mask = data[:, MASK_OFF:MASK_OFF + 1]            # (tb, 1) episode-reset mask
    h = h_ref[...] * mask
    x_bf = x.astype(jnp.bfloat16)                    # cast once per operand
    h_bf = h.astype(jnp.bfloat16)
    gi = mm(x_bf, WIH_COL, 3 * LANES) + vrow_full(IV_BIH)   # fused r|z|n
    gh = mm(h_bf, WHH_COL, 3 * LANES) + vrow_full(IV_BHH)   # fused r|z|n
    r = jax.nn.sigmoid(gi[:, 0:LANES] + gh[:, 0:LANES])
    z = jax.nn.sigmoid(gi[:, LANES:2 * LANES] + gh[:, LANES:2 * LANES])
    n = jnp.tanh(gi[:, 2 * LANES:3 * LANES] + r * gh[:, 2 * LANES:3 * LANES])
    h_new = (1.0 - z) * n + z * h
    xa = _masked_layernorm(h_new, hid_lanes, HIDDEN, vrow(IV_GG), vrow(IV_BG))

    # ---- ACTLayer (Discrete, deterministic): logits live at the avail lanes ----
    logits = mm(xa.astype(jnp.bfloat16), WA_COL, LANES) + vrow(IV_BA)
    avail_ok = data > 0.0                            # avail lanes hold {0,1}
    masked = jnp.where(act_lanes,
                       jnp.where(avail_ok, logits, -1e10),   # unavailable action
                       -1e30)                                 # non-action pad lane
    m = jnp.max(masked, axis=-1, keepdims=True)
    lse = jnp.log(jnp.sum(jnp.exp(masked - m), axis=-1, keepdims=True)) + m
    sel = jnp.min(jnp.where(masked >= m, lane, LANES), axis=-1, keepdims=True)
    act_f = (sel - AVAIL_OFF).astype(jnp.float32)
    logp = m - lse                                   # selected logit == m

    # Single lane-dense output: hidden in [0:HIDDEN], action / logp in the two
    # lanes just past it (they never feed back into GRU math: padded weight
    # rows are zero and the LayerNorm is lane-masked).
    out_ref[...] = (jnp.where(hid_lanes, h_new, 0.0)
                    + jnp.where(lane == ACT_LANE, act_f, 0.0)
                    + jnp.where(lane == LOGP_LANE, logp, 0.0))


def init_params(key):
    """Build the packed parameter slabs (bf16 weight slab, f32 vector slab)."""
    ks = jax.random.split(key, 7)

    def nrm(k, shape, scale=0.1):
        return (scale * jax.random.normal(k, shape)).astype(jnp.float32)

    w1 = nrm(ks[0], (OBS_DIM, HIDDEN))
    w2 = nrm(ks[1], (HIDDEN, HIDDEN))
    wih = nrm(ks[2], (HIDDEN, 3 * HIDDEN))     # pre-transposed, gate order r|z|n
    whh = nrm(ks[3], (HIDDEN, 3 * HIDDEN))
    bih = nrm(ks[4], (3 * HIDDEN,), 0.01)
    bhh = nrm(ks[5], (3 * HIDDEN,), 0.01)
    wa = nrm(ks[6], (HIDDEN, ACT_DIM))

    W = jnp.zeros((LANES, NWCOL), jnp.float32)
    W = W.at[:OBS_DIM, W1_COL:W1_COL + HIDDEN].set(w1)
    W = W.at[:HIDDEN, W2_COL:W2_COL + HIDDEN].set(w2)
    # action-head columns sit at the same lanes where available_actions live in
    # the data slab so the in-kernel mask is an aligned select.
    W = W.at[:HIDDEN, WA_COL + AVAIL_OFF:WA_COL + AVAIL_OFF + ACT_DIM].set(wa)
    for g in range(3):                         # fused gate blocks, lane-aligned
        W = W.at[:HIDDEN, WIH_COL + g * LANES:WIH_COL + g * LANES + HIDDEN].set(
            wih[:, g * HIDDEN:(g + 1) * HIDDEN])
        W = W.at[:HIDDEN, WHH_COL + g * LANES:WHH_COL + g * LANES + HIDDEN].set(
            whh[:, g * HIDDEN:(g + 1) * HIDDEN])
    w_slab = W.astype(jnp.bfloat16)

    V = jnp.zeros((NV, VCOL), jnp.float32)
    V = V.at[IV_FNG, :OBS_DIM].set(1.0)          # feature_norm gamma
    V = V.at[IV_G1, :HIDDEN].set(1.0)            # fc1 LayerNorm gamma
    V = V.at[IV_G2, :HIDDEN].set(1.0)            # fc2 LayerNorm gamma
    V = V.at[IV_GG, :HIDDEN].set(1.0)            # RNNLayer LayerNorm gamma
    for g in range(3):
        V = V.at[IV_BIH, g * LANES:g * LANES + HIDDEN].set(
            bih[g * HIDDEN:(g + 1) * HIDDEN])
        V = V.at[IV_BHH, g * LANES:g * LANES + HIDDEN].set(
            bhh[g * HIDDEN:(g + 1) * HIDDEN])
    # LayerNorm betas, linear biases and ba stay zero (matches module init).
    return w_slab, V


def _pick_tile(batch):
    """Grid sizing: one step on single-TC chips (v5e/v6e), two parallel batch
    tiles on v7x (2 TensorCores/chip)."""
    kind = ""
    try:
        kind = jax.devices()[0].device_kind.lower()
    except Exception:
        pass
    two_tc = ("v7" in kind) or ("tpu7" in kind) or ("7x" in kind)
    if two_tc and batch >= 16 and (batch // 2) % 8 == 0:
        return batch // 2
    return batch


def _forward(w_slab, v_slab, h_pad, obs, masks, avail):
    """Returns (actions (B,1) int32, action_log_probs (B,1) f32,
    new lane-padded hidden/aux slab (B, 128) f32)."""
    bq = obs.shape[0]
    tile_b = _pick_tile(bq)
    assert bq % tile_b == 0
    # pack obs | available_actions | masks into one lane-dense (B, 128) slab
    pad = jnp.zeros((bq, LANES - MASK_OFF - 1), jnp.float32)
    data = jnp.concatenate([obs, avail, masks, pad], axis=-1)

    row_spec = pl.BlockSpec((tile_b, LANES), lambda i: (i, 0))
    out = pl.pallas_call(
        r_actor_kernel,
        grid=(bq // tile_b,),
        in_specs=[
            row_spec,                                           # data slab
            row_spec,                                           # hidden state
            pl.BlockSpec((LANES, NWCOL), lambda i: (0, 0)),     # weights (VMEM resident)
            pl.BlockSpec((NV, VCOL), lambda i: (0, 0)),         # vec params (VMEM resident)
        ],
        out_specs=row_spec,
        out_shape=jax.ShapeDtypeStruct((bq, LANES), jnp.float32),
        input_output_aliases={1: 0},      # hidden state updated in place (P8)
        compiler_params=pltpu.CompilerParams(
            dimension_semantics=("parallel",)),
    )(data, h_pad, w_slab, v_slab)

    actions = out[:, ACT_LANE:ACT_LANE + 1].astype(jnp.int32)
    action_log_probs = out[:, LOGP_LANE:LOGP_LANE + 1]
    return actions, action_log_probs, out


# hidden state is donated so the in-kernel aliasing really is in place.
r_actor_forward = jax.jit(_forward, donate_argnums=(2,))


if __name__ == "__main__":
    key = jax.random.PRNGKey(0)
    k_obs, k_h, k_params = jax.random.split(key, 3)

    w_slab, v_slab = init_params(k_params)

    obs = jax.random.normal(k_obs, (B, OBS_DIM), dtype=jnp.float32)
    rnn_states = jax.random.normal(k_h, (B, RECURRENT_N, HIDDEN), dtype=jnp.float32)
    masks = jnp.ones((B, 1), jnp.float32).at[0, 0].set(0.0)           # reset agent 0
    avail = jnp.ones((B, ACT_DIM), jnp.float32).at[:, -1].set(0.0)    # last action masked

    # hidden state is carried lane-padded as (B, 128); converted once from the
    # MAPPO (B, recurrent_N, hidden) convention.
    h_pad = jnp.zeros((B, LANES), jnp.float32).at[:, :HIDDEN].set(rnn_states[:, 0, :])

    actions, action_log_probs, h_pad = r_actor_forward(
        w_slab, v_slab, h_pad, obs, masks, avail)
    jax.block_until_ready((actions, action_log_probs, h_pad))

    new_rnn_states = h_pad[:, :HIDDEN][:, None, :]
    assert actions.shape == (B, 1) and actions.dtype == jnp.int32
    assert action_log_probs.shape == (B, 1)
    assert new_rnn_states.shape == (B, RECURRENT_N, HIDDEN)
    assert bool(jnp.all((actions >= 0) & (actions < ACT_DIM - 1)))  # masked action never picked
    assert bool(jnp.all(jnp.isfinite(action_log_probs)))
    assert bool(jnp.all(action_log_probs <= 0.0))
    print("KERNEL_OK")
</pallas_src>

<mosaic_0001>
module attributes {stable_mosaic.version = 11 : i64} {
  func.func @r_actor_kernel(%arg0: i32, %arg1: memref<32x128xf32, #tpu.memory_space<vmem>>, %arg2: memref<32x128xf32, #tpu.memory_space<vmem>>, %arg3: memref<128x1152xbf16, #tpu.memory_space<vmem>>, %arg4: memref<13x384xf32, #tpu.memory_space<vmem>>, %arg5: memref<32x128xf32, #tpu.memory_space<vmem>>) attributes {dimension_semantics = [#tpu.dimension_semantics<parallel>], iteration_bounds = array<i64: 1>, scalar_prefetch = 0 : i64, scratch_operands = 0 : i64, tpu.core_type = #tpu.core_type<tc>, window_params = [{transform_indices = @transform_0, window_bounds = array<i64: 32, 128>}, {transform_indices = @transform_1, window_bounds = array<i64: 32, 128>}, {pipeline_mode = #tpu.pipeline_mode<synchronous>, transform_indices = @transform_2, window_bounds = array<i64: 128, 1152>}, {pipeline_mode = #tpu.pipeline_mode<synchronous>, transform_indices = @transform_3, window_bounds = array<i64: 13, 384>}, {transform_indices = @transform_4, window_bounds = array<i64: 32, 128>}]} {
    %0 = tpu.iota {dimensions = array<i32: 1>} : vector<32x128xi32>
    %c32_i32 = arith.constant 32 : i32
    %1 = vector.broadcast %c32_i32 : i32 to vector<32x128xi32>
    %2 = arith.cmpi slt, %0, %1 : vector<32x128xi32>
    %c64_i32 = arith.constant 64 : i32
    %3 = vector.broadcast %c64_i32 : i32 to vector<32x128xi32>
    %4 = arith.cmpi slt, %0, %3 : vector<32x128xi32>
    %c32_i32_0 = arith.constant 32 : i32
    %5 = vector.broadcast %c32_i32_0 : i32 to vector<32x128xi32>
    %6 = arith.cmpi sge, %0, %5 : vector<32x128xi32>
    %c40_i32 = arith.constant 40 : i32
    %7 = vector.broadcast %c40_i32 : i32 to vector<32x128xi32>
    %8 = arith.cmpi slt, %0, %7 : vector<32x128xi32>
    %9 = arith.andi %6, %8 : vector<32x128xi1>
    %c0 = arith.constant 0 : index
    %c0_1 = arith.constant 0 : index
    %10 = vector.load %arg1[%c0, %c0_1] : memref<32x128xf32, #tpu.memory_space<vmem>>, vector<32x128xf32>
    %c0_2 = arith.constant 0 : index
    %c0_3 = arith.constant 0 : index
    %11 = vector.load %arg4[%c0_2, %c0_3] : memref<13x384xf32, #tpu.memory_space<vmem>>, vector<1x128xf32>
    %c1 = arith.constant 1 : index
    %c0_4 = arith.constant 0 : index
    %12 = vector.load %arg4[%c1, %c0_4] : memref<13x384xf32, #tpu.memory_space<vmem>>, vector<1x128xf32>
    %cst = arith.constant 0.000000e+00 : f32
    %13 = vector.broadcast %cst : f32 to vector<32x128xf32>
    %14 = arith.select %2, %10, %13 : vector<32x128xi1>, vector<32x128xf32>
    %cst_5 = arith.constant dense<0.000000e+00> : vector<32xf32>
    %15 = vector.multi_reduction <add>, %14, %cst_5 [1] : vector<32x128xf32> to vector<32xf32>
    %16 = vector.shape_cast %15 : vector<32xf32> to vector<32x1xf32>
    %cst_6 = arith.constant 3.125000e-02 : f32
    %17 = vector.broadcast %cst_6 : f32 to vector<32x1xf32>
    %18 = arith.mulf %16, %17 : vector<32x1xf32>
    %19 = vector.broadcast %18 : vector<32x1xf32> to vector<32x128xf32>
    %20 = arith.subf %14, %19 : vector<32x128xf32>
    %cst_7 = arith.constant 0.000000e+00 : f32
    %21 = vector.broadcast %cst_7 : f32 to vector<32x128xf32>
    %22 = arith.select %2, %20, %21 : vector<32x128xi1>, vector<32x128xf32>
    %23 = arith.mulf %22, %22 : vector<32x128xf32>
    %cst_8 = arith.constant dense<0.000000e+00> : vector<32xf32>
    %24 = vector.multi_reduction <add>, %23, %cst_8 [1] : vector<32x128xf32> to vector<32xf32>
    %25 = vector.shape_cast %24 : vector<32xf32> to vector<32x1xf32>
    %cst_9 = arith.constant 3.125000e-02 : f32
    %26 = vector.broadcast %cst_9 : f32 to vector<32x1xf32>
    %27 = arith.mulf %25, %26 : vector<32x1xf32>
    %cst_10 = arith.constant 9.99999974E-6 : f32
    %28 = vector.broadcast %cst_10 : f32 to vector<32x1xf32>
    %29 = arith.addf %27, %28 : vector<32x1xf32>
    %30 = math.rsqrt %29 : vector<32x1xf32>
    %31 = vector.broadcast %30 : vector<32x1xf32> to vector<32x128xf32>
    %32 = arith.mulf %22, %31 : vector<32x128xf32>
    %33 = vector.broadcast %11 : vector<1x128xf32> to vector<32x128xf32>
    %34 = arith.mulf %32, %33 : vector<32x128xf32>
    %35 = vector.broadcast %12 : vector<1x128xf32> to vector<32x128xf32>
    %36 = arith.addf %34, %35 : vector<32x128xf32>
    %37 = arith.truncf %36 : vector<32x128xf32> to vector<32x128xbf16>
    %c0_11 = arith.constant 0 : index
    %c0_12 = arith.constant 0 : index
    %38 = vector.load %arg3[%c0_11, %c0_12] : memref<128x1152xbf16, #tpu.memory_space<vmem>>, vector<128x128xbf16>
    %cst_13 = arith.constant dense<0.000000e+00> : vector<32x128xf32>
    %39 = tpu.matmul %37, %38, %cst_13 {dimension_numbers = #tpu.dot_dimension_numbers<[1], [0], [0], [1], [0, 0, 1, 1], [], []>} : vector<32x128xbf16>, vector<128x128xbf16>, vector<32x128xf32> -> vector<32x128xf32>
    %c2 = arith.constant 2 : index
    %c0_14 = arith.constant 0 : index
    %40 = vector.load %arg4[%c2, %c0_14] : memref<13x384xf32, #tpu.memory_space<vmem>>, vector<1x128xf32>
    %41 = vector.broadcast %40 : vector<1x128xf32> to vector<32x128xf32>
    %42 = arith.addf %39, %41 : vector<32x128xf32>
    %cst_15 = arith.constant 0.000000e+00 : f32
    %43 = vector.broadcast %cst_15 : f32 to vector<32x128xf32>
    %44 = arith.maximumf %42, %43 : vector<32x128xf32>
    %c3 = arith.constant 3 : index
    %c0_16 = arith.constant 0 : index
    %45 = vector.load %arg4[%c3, %c0_16] : memref<13x384xf32, #tpu.memory_space<vmem>>, vector<1x128xf32>
    %c4 = arith.constant 4 : index
    %c0_17 = arith.constant 0 : index
    %46 = vector.load %arg4[%c4, %c0_17] : memref<13x384xf32, #tpu.memory_space<vmem>>, vector<1x128xf32>
    %cst_18 = arith.constant 0.000000e+00 : f32
    %47 = vector.broadcast %cst_18 : f32 to vector<32x128xf32>
    %48 = arith.select %4, %44, %47 : vector<32x128xi1>, vector<32x128xf32>
    %cst_19 = arith.constant dense<0.000000e+00> : vector<32xf32>
    %49 = vector.multi_reduction <add>, %48, %cst_19 [1] : vector<32x128xf32> to vector<32xf32>
    %50 = vector.shape_cast %49 : vector<32xf32> to vector<32x1xf32>
    %cst_20 = arith.constant 1.562500e-02 : f32
    %51 = vector.broadcast %cst_20 : f32 to vector<32x1xf32>
    %52 = arith.mulf %50, %51 : vector<32x1xf32>
    %53 = vector.broadcast %52 : vector<32x1xf32> to vector<32x128xf32>
    %54 = arith.subf %48, %53 : vector<32x128xf32>
    %cst_21 = arith.constant 0.000000e+00 : f32
    %55 = vector.broadcast %cst_21 : f32 to vector<32x128xf32>
    %56 = arith.select %4, %54, %55 : vector<32x128xi1>, vector<32x128xf32>
    %57 = arith.mulf %56, %56 : vector<32x128xf32>
    %cst_22 = arith.constant dense<0.000000e+00> : vector<32xf32>
    %58 = vector.multi_reduction <add>, %57, %cst_22 [1] : vector<32x128xf32> to vector<32xf32>
    %59 = vector.shape_cast %58 : vector<32xf32> to vector<32x1xf32>
    %cst_23 = arith.constant 1.562500e-02 : f32
    %60 = vector.broadcast %cst_23 : f32 to vector<32x1xf32>
    %61 = arith.mulf %59, %60 : vector<32x1xf32>
    %cst_24 = arith.constant 9.99999974E-6 : f32
    %62 = vector.broadcast %cst_24 : f32 to vector<32x1xf32>
    %63 = arith.addf %61, %62 : vector<32x1xf32>
    %64 = math.rsqrt %63 : vector<32x1xf32>
    %65 = vector.broadcast %64 : vector<32x1xf32> to vector<32x128xf32>
    %66 = arith.mulf %56, %65 : vector<32x128xf32>
    %67 = vector.broadcast %45 : vector<1x128xf32> to vector<32x128xf32>
    %68 = arith.mulf %66, %67 : vector<32x128xf32>
    %69 = vector.broadcast %46 : vector<1x128xf32> to vector<32x128xf32>
    %70 = arith.addf %68, %69 : vector<32x128xf32>
    %71 = arith.truncf %70 : vector<32x128xf32> to vector<32x128xbf16>
    %c0_25 = arith.constant 0 : index
    %c128 = arith.constant 128 : index
    %72 = vector.load %arg3[%c0_25, %c128] : memref<128x1152xbf16, #tpu.memory_space<vmem>>, vector<128x128xbf16>
    %cst_26 = arith.constant dense<0.000000e+00> : vector<32x128xf32>
    %73 = tpu.matmul %71, %72, %cst_26 {dimension_numbers = #tpu.dot_dimension_numbers<[1], [0], [0], [1], [0, 0, 1, 1], [], []>} : vector<32x128xbf16>, vector<128x128xbf16>, vector<32x128xf32> -> vector<32x128xf32>
    %c5 = arith.constant 5 : index
    %c0_27 = arith.constant 0 : index
    %74 = vector.load %arg4[%c5, %c0_27] : memref<13x384xf32, #tpu.memory_space<vmem>>, vector<1x128xf32>
    %75 = vector.broadcast %74 : vector<1x128xf32> to vector<32x128xf32>
    %76 = arith.addf %73, %75 : vector<32x128xf32>
    %cst_28 = arith.constant 0.000000e+00 : f32
    %77 = vector.broadcast %cst_28 : f32 to vector<32x128xf32>
    %78 = arith.maximumf %76, %77 : vector<32x128xf32>
    %c6 = arith.constant 6 : index
    %c0_29 = arith.constant 0 : index
    %79 = vector.load %arg4[%c6, %c0_29] : memref<13x384xf32, #tpu.memory_space<vmem>>, vector<1x128xf32>
    %c7 = arith.constant 7 : index
    %c0_30 = arith.constant 0 : index
    %80 = vector.load %arg4[%c7, %c0_30] : memref<13x384xf32, #tpu.memory_space<vmem>>, vector<1x128xf32>
    %cst_31 = arith.constant 0.000000e+00 : f32
    %81 = vector.broadcast %cst_31 : f32 to vector<32x128xf32>
    %82 = arith.select %4, %78, %81 : vector<32x128xi1>, vector<32x128xf32>
    %cst_32 = arith.constant dense<0.000000e+00> : vector<32xf32>
    %83 = vector.multi_reduction <add>, %82, %cst_32 [1] : vector<32x128xf32> to vector<32xf32>
    %84 = vector.shape_cast %83 : vector<32xf32> to vector<32x1xf32>
    %cst_33 = arith.constant 1.562500e-02 : f32
    %85 = vector.broadcast %cst_33 : f32 to vector<32x1xf32>
    %86 = arith.mulf %84, %85 : vector<32x1xf32>
    %87 = vector.broadcast %86 : vector<32x1xf32> to vector<32x128xf32>
    %88 = arith.subf %82, %87 : vector<32x128xf32>
    %cst_34 = arith.constant 0.000000e+00 : f32
    %89 = vector.broadcast %cst_34 : f32 to vector<32x128xf32>
    %90 = arith.select %4, %88, %89 : vector<32x128xi1>, vector<32x128xf32>
    %91 = arith.mulf %90, %90 : vector<32x128xf32>
    %cst_35 = arith.constant dense<0.000000e+00> : vector<32xf32>
    %92 = vector.multi_reduction <add>, %91, %cst_35 [1] : vector<32x128xf32> to vector<32xf32>
    %93 = vector.shape_cast %92 : vector<32xf32> to vector<32x1xf32>
    %cst_36 = arith.constant 1.562500e-02 : f32
    %94 = vector.broadcast %cst_36 : f32 to vector<32x1xf32>
    %95 = arith.mulf %93, %94 : vector<32x1xf32>
    %cst_37 = arith.constant 9.99999974E-6 : f32
    %96 = vector.broadcast %cst_37 : f32 to vector<32x1xf32>
    %97 = arith.addf %95, %96 : vector<32x1xf32>
    %98 = math.rsqrt %97 : vector<32x1xf32>
    %99 = vector.broadcast %98 : vector<32x1xf32> to vector<32x128xf32>
    %100 = arith.mulf %90, %99 : vector<32x128xf32>
    %101 = vector.broadcast %79 : vector<1x128xf32> to vector<32x128xf32>
    %102 = arith.mulf %100, %101 : vector<32x128xf32>
    %103 = vector.broadcast %80 : vector<1x128xf32> to vector<32x128xf32>
    %104 = arith.addf %102, %103 : vector<32x128xf32>
    %105 = vector.extract_strided_slice %10 {offsets = [0, 40], sizes = [32, 1], strides = [1, 1]} : vector<32x128xf32> to vector<32x1xf32>
    %c0_38 = arith.constant 0 : index
    %c0_39 = arith.constant 0 : index
    %106 = vector.load %arg2[%c0_38, %c0_39] : memref<32x128xf32, #tpu.memory_space<vmem>>, vector<32x128xf32>
    %107 = vector.broadcast %105 : vector<32x1xf32> to vector<32x128xf32>
    %108 = arith.mulf %106, %107 : vector<32x128xf32>
    %109 = arith.truncf %104 : vector<32x128xf32> to vector<32x128xbf16>
    %110 = arith.truncf %108 : vector<32x128xf32> to vector<32x128xbf16>
    %c0_40 = arith.constant 0 : index
    %c384 = arith.constant 384 : index
    %111 = vector.load %arg3[%c0_40, %c384] : memref<128x1152xbf16, #tpu.memory_space<vmem>>, vector<128x384xbf16>
    %cst_41 = arith.constant dense<0.000000e+00> : vector<32x384xf32>
    %112 = tpu.matmul %109, %111, %cst_41 {dimension_numbers = #tpu.dot_dimension_numbers<[1], [0], [0], [1], [0, 0, 1, 1], [], []>} : vector<32x128xbf16>, vector<128x384xbf16>, vector<32x384xf32> -> vector<32x384xf32>
    %c11 = arith.constant 11 : index
    %c0_42 = arith.constant 0 : index
    %113 = vector.load %arg4[%c11, %c0_42] : memref<13x384xf32, #tpu.memory_space<vmem>>, vector<1x384xf32>
    %114 = vector.broadcast %113 : vector<1x384xf32> to vector<32x384xf32>
    %115 = arith.addf %112, %114 : vector<32x384xf32>
    %c0_43 = arith.constant 0 : index
    %c768 = arith.constant 768 : index
    %116 = vector.load %arg3[%c0_43, %c768] : memref<128x1152xbf16, #tpu.memory_space<vmem>>, vector<128x384xbf16>
    %cst_44 = arith.constant dense<0.000000e+00> : vector<32x384xf32>
    %117 = tpu.matmul %110, %116, %cst_44 {dimension_numbers = #tpu.dot_dimension_numbers<[1], [0], [0], [1], [0, 0, 1, 1], [], []>} : vector<32x128xbf16>, vector<128x384xbf16>, vector<32x384xf32> -> vector<32x384xf32>
    %c12 = arith.constant 12 : index
    %c0_45 = arith.constant 0 : index
    %118 = vector.load %arg4[%c12, %c0_45] : memref<13x384xf32, #tpu.memory_space<vmem>>, vector<1x384xf32>
    %119 = vector.broadcast %118 : vector<1x384xf32> to vector<32x384xf32>
    %120 = arith.addf %117, %119 : vector<32x384xf32>
    %121 = vector.extract_strided_slice %115 {offsets = [0, 0], sizes = [32, 128], strides = [1, 1]} : vector<32x384xf32> to vector<32x128xf32>
    %122 = vector.extract_strided_slice %120 {offsets = [0, 0], sizes = [32, 128], strides = [1, 1]} : vector<32x384xf32> to vector<32x128xf32>
    %123 = arith.addf %121, %122 : vector<32x128xf32>
    %124 = arith.negf %123 : vector<32x128xf32>
    %125 = math.exp %124 : vector<32x128xf32>
    %cst_46 = arith.constant 1.000000e+00 : f32
    %126 = vector.broadcast %cst_46 : f32 to vector<32x128xf32>
    %127 = arith.addf %126, %125 : vector<32x128xf32>
    %128 = arith.divf %126, %127 : vector<32x128xf32>
    %129 = vector.extract_strided_slice %115 {offsets = [0, 128], sizes = [32, 128], strides = [1, 1]} : vector<32x384xf32> to vector<32x128xf32>
    %130 = vector.extract_strided_slice %120 {offsets = [0, 128], sizes = [32, 128], strides = [1, 1]} : vector<32x384xf32> to vector<32x128xf32>
    %131 = arith.addf %129, %130 : vector<32x128xf32>
    %132 = arith.negf %131 : vector<32x128xf32>
    %133 = math.exp %132 : vector<32x128xf32>
    %cst_47 = arith.constant 1.000000e+00 : f32
    %134 = vector.broadcast %cst_47 : f32 to vector<32x128xf32>
    %135 = arith.addf %134, %133 : vector<32x128xf32>
    %136 = arith.divf %134, %135 : vector<32x128xf32>
    %137 = vector.extract_strided_slice %115 {offsets = [0, 256], sizes = [32, 128], strides = [1, 1]} : vector<32x384xf32> to vector<32x128xf32>
    %138 = vector.extract_strided_slice %120 {offsets = [0, 256], sizes = [32, 128], strides = [1, 1]} : vector<32x384xf32> to vector<32x128xf32>
    %139 = arith.mulf %128, %138 : vector<32x128xf32>
    %140 = arith.addf %137, %139 : vector<32x128xf32>
    %141 = math.tanh %140 : vector<32x128xf32>
    %cst_48 = arith.constant 1.000000e+00 : f32
    %142 = vector.broadcast %cst_48 : f32 to vector<32x128xf32>
    %143 = arith.subf %142, %136 : vector<32x128xf32>
    %144 = arith.mulf %143, %141 : vector<32x128xf32>
    %145 = arith.mulf %136, %108 : vector<32x128xf32>
    %146 = arith.addf %144, %145 : vector<32x128xf32>
    %c8 = arith.constant 8 : index
    %c0_49 = arith.constant 0 : index
    %147 = vector.load %arg4[%c8, %c0_49] : memref<13x384xf32, #tpu.memory_space<vmem>>, vector<1x128xf32>
    %c9 = arith.constant 9 : index
    %c0_50 = arith.constant 0 : index
    %148 = vector.load %arg4[%c9, %c0_50] : memref<13x384xf32, #tpu.memory_space<vmem>>, vector<1x128xf32>
    %cst_51 = arith.constant 0.000000e+00 : f32
    %149 = vector.broadcast %cst_51 : f32 to vector<32x128xf32>
    %150 = arith.select %4, %146, %149 : vector<32x128xi1>, vector<32x128xf32>
    %cst_52 = arith.constant dense<0.000000e+00> : vector<32xf32>
    %151 = vector.multi_reduction <add>, %150, %cst_52 [1] : vector<32x128xf32> to vector<32xf32>
    %152 = vector.shape_cast %151 : vector<32xf32> to vector<32x1xf32>
    %cst_53 = arith.constant 1.562500e-02 : f32
    %153 = vector.broadcast %cst_53 : f32 to vector<32x1xf32>
    %154 = arith.mulf %152, %153 : vector<32x1xf32>
    %155 = vector.broadcast %154 : vector<32x1xf32> to vector<32x128xf32>
    %156 = arith.subf %150, %155 : vector<32x128xf32>
    %cst_54 = arith.constant 0.000000e+00 : f32
    %157 = vector.broadcast %cst_54 : f32 to vector<32x128xf32>
    %158 = arith.select %4, %156, %157 : vector<32x128xi1>, vector<32x128xf32>
    %159 = arith.mulf %158, %158 : vector<32x128xf32>
    %cst_55 = arith.constant dense<0.000000e+00> : vector<32xf32>
    %160 = vector.multi_reduction <add>, %159, %cst_55 [1] : vector<32x128xf32> to vector<32xf32>
    %161 = vector.shape_cast %160 : vector<32xf32> to vector<32x1xf32>
    %cst_56 = arith.constant 1.562500e-02 : f32
    %162 = vector.broadcast %cst_56 : f32 to vector<32x1xf32>
    %163 = arith.mulf %161, %162 : vector<32x1xf32>
    %cst_57 = arith.constant 9.99999974E-6 : f32
    %164 = vector.broadcast %cst_57 : f32 to vector<32x1xf32>
    %165 = arith.addf %163, %164 : vector<32x1xf32>
    %166 = math.rsqrt %165 : vector<32x1xf32>
    %167 = vector.broadcast %166 : vector<32x1xf32> to vector<32x128xf32>
    %168 = arith.mulf %158, %167 : vector<32x128xf32>
    %169 = vector.broadcast %147 : vector<1x128xf32> to vector<32x128xf32>
    %170 = arith.mulf %168, %169 : vector<32x128xf32>
    %171 = vector.broadcast %148 : vector<1x128xf32> to vector<32x128xf32>
    %172 = arith.addf %170, %171 : vector<32x128xf32>
    %173 = arith.truncf %172 : vector<32x128xf32> to vector<32x128xbf16>
    %c0_58 = arith.constant 0 : index
    %c256 = arith.constant 256 : index
    %174 = vector.load %arg3[%c0_58, %c256] : memref<128x1152xbf16, #tpu.memory_space<vmem>>, vector<128x128xbf16>
    %cst_59 = arith.constant dense<0.000000e+00> : vector<32x128xf32>
    %175 = tpu.matmul %173, %174, %cst_59 {dimension_numbers = #tpu.dot_dimension_numbers<[1], [0], [0], [1], [0, 0, 1, 1], [], []>} : vector<32x128xbf16>, vector<128x128xbf16>, vector<32x128xf32> -> vector<32x128xf32>
    %c10 = arith.constant 10 : index
    %c0_60 = arith.constant 0 : index
    %176 = vector.load %arg4[%c10, %c0_60] : memref<13x384xf32, #tpu.memory_space<vmem>>, vector<1x128xf32>
    %177 = vector.broadcast %176 : vector<1x128xf32> to vector<32x128xf32>
    %178 = arith.addf %175, %177 : vector<32x128xf32>
    %cst_61 = arith.constant 0.000000e+00 : f32
    %179 = vector.broadcast %cst_61 : f32 to vector<32x128xf32>
    %180 = arith.cmpf ogt, %10, %179 : vector<32x128xf32>
    %cst_62 = arith.constant -1.000000e+10 : f32
    %181 = vector.broadcast %cst_62 : f32 to vector<32x128xf32>
    %182 = arith.select %180, %178, %181 : vector<32x128xi1>, vector<32x128xf32>
    %cst_63 = arith.constant -1.000000e+30 : f32
    %183 = vector.broadcast %cst_63 : f32 to vector<32x128xf32>
    %184 = arith.select %9, %182, %183 : vector<32x128xi1>, vector<32x128xf32>
    %cst_64 = arith.constant dense<0xFF800000> : vector<32xf32>
    %185 = vector.multi_reduction <maximumf>, %184, %cst_64 [1] : vector<32x128xf32> to vector<32xf32>
    %186 = vector.shape_cast %185 : vector<32xf32> to vector<32x1xf32>
    %187 = vector.broadcast %186 : vector<32x1xf32> to vector<32x128xf32>
    %188 = arith.subf %184, %187 : vector<32x128xf32>
    %189 = math.exp %188 : vector<32x128xf32>
    %cst_65 = arith.constant dense<0.000000e+00> : vector<32xf32>
    %190 = vector.multi_reduction <add>, %189, %cst_65 [1] : vector<32x128xf32> to vector<32xf32>
    %191 = vector.shape_cast %190 : vector<32xf32> to vector<32x1xf32>
    %192 = math.log %191 : vector<32x1xf32>
    %193 = arith.addf %192, %186 : vector<32x1xf32>
    %194 = vector.broadcast %186 : vector<32x1xf32> to vector<32x128xf32>
    %195 = arith.cmpf oge, %184, %194 : vector<32x128xf32>
    %c128_i32 = arith.constant 128 : i32
    %196 = vector.broadcast %c128_i32 : i32 to vector<32x128xi32>
    %197 = arith.select %195, %0, %196 : vector<32x128xi1>, vector<32x128xi32>
    %cst_66 = arith.constant dense<2147483647> : vector<32xi32>
    %198 = vector.multi_reduction <minsi>, %197, %cst_66 [1] : vector<32x128xi32> to vector<32xi32>
    %199 = vector.shape_cast %198 : vector<32xi32> to vector<32x1xi32>
    %c32_i32_67 = arith.constant 32 : i32
    %200 = vector.broadcast %c32_i32_67 : i32 to vector<32x1xi32>
    %201 = arith.subi %199, %200 : vector<32x1xi32>
    %202 = arith.sitofp %201 : vector<32x1xi32> to vector<32x1xf32>
    %203 = arith.subf %186, %193 : vector<32x1xf32>
    %cst_68 = arith.constant 0.000000e+00 : f32
    %204 = vector.broadcast %cst_68 : f32 to vector<32x128xf32>
    %205 = arith.select %4, %146, %204 : vector<32x128xi1>, vector<32x128xf32>
    %c64_i32_69 = arith.constant 64 : i32
    %206 = vector.broadcast %c64_i32_69 : i32 to vector<32x128xi32>
    %207 = arith.cmpi eq, %0, %206 : vector<32x128xi32>
    %cst_70 = arith.constant 0.000000e+00 : f32
    %208 = vector.shape_cast %202 : vector<32x1xf32> to vector<32x1xf32>
    %209 = vector.broadcast %208 : vector<32x1xf32> to vector<32x128xf32>
    %210 = vector.broadcast %cst_70 : f32 to vector<32x128xf32>
    %211 = arith.select %207, %209, %210 : vector<32x128xi1>, vector<32x128xf32>
    %212 = arith.addf %205, %211 : vector<32x128xf32>
    %c65_i32 = arith.constant 65 : i32
    %213 = vector.broadcast %c65_i32 : i32 to vector<32x128xi32>
    %214 = arith.cmpi eq, %0, %213 : vector<32x128xi32>
    %cst_71 = arith.constant 0.000000e+00 : f32
    %215 = vector.shape_cast %203 : vector<32x1xf32> to vector<32x1xf32>
    %216 = vector.broadcast %215 : vector<32x1xf32> to vector<32x128xf32>
    %217 = vector.broadcast %cst_71 : f32 to vector<32x128xf32>
    %218 = arith.select %214, %216, %217 : vector<32x128xi1>, vector<32x128xf32>
    %219 = arith.addf %212, %218 : vector<32x128xf32>
    %c0_72 = arith.constant 0 : index
    %c0_73 = arith.constant 0 : index
    %220 = vector.load %arg5[%c0_72, %c0_73] : memref<32x128xf32, #tpu.memory_space<vmem>>, vector<32x128xf32>
    tpu.vector_store %arg5[%c0_72, %c0_73], %219 {strides = array<i32>} : memref<32x128xf32, #tpu.memory_space<vmem>>, vector<32x128xf32>,
    return
  }
  func.func @transform_0(%arg0: i32) -> (i32, i32) {
    %c0_i32 = arith.constant 0 : i32
    %c0_i32_0 = arith.constant 0 : i32
    return %arg0, %c0_i32 : i32, i32
  }
  func.func @transform_1(%arg0: i32) -> (i32, i32) {
    %c0_i32 = arith.constant 0 : i32
    %c0_i32_0 = arith.constant 0 : i32
    return %arg0, %c0_i32 : i32, i32
  }
  func.func @transform_2(%arg0: i32) -> (i32, i32) {
    %c0_i32 = arith.constant 0 : i32
    %c0_i32_0 = arith.constant 0 : i32
    %c0_i32_1 = arith.constant 0 : i32
    return %c0_i32, %c0_i32_0 : i32, i32
  }
  func.func @transform_3(%arg0: i32) -> (i32, i32) {
    %c0_i32 = arith.constant 0 : i32
    %c0_i32_0 = arith.constant 0 : i32
    %c0_i32_1 = arith.constant 0 : i32
    return %c0_i32, %c0_i32_0 : i32, i32
  }
  func.func @transform_4(%arg0: i32) -> (i32, i32) {
    %c0_i32 = arith.constant 0 : i32
    %c0_i32_0 = arith.constant 0 : i32
    return %arg0, %c0_i32 : i32, i32
  }
}

</mosaic_0001>

<bundles_post_ra>
// kernel: _forward.1
= control target key start
LH: loop header
LB: loop body
LE: loop exit
PB: predicated region body
PF: predicated region fallthrough
CT: control target
= control target key end

     0   :  { %9 = vsyncpa [#allocation3], 0  ;;  %s1949_s15 = smov [#allocation2]   ;;  %s2302_s0 = inlined_call_operand.vmem [shape: f32[32,128], index: 0, kind: input, shape index: {}]   ;;  %s2303_s1 = inlined_call_operand.vmem [shape: f32[32,128], index: 1, kind: input, shape index: {}, may-alias: {1,4}]   ;;  %s2304_s2 = inlined_call_operand.hbm [shape: bf16[128,1152], index: 2, kind: input, shape index: {}]   ;;  %s2305_s3 = inlined_call_operand.vmem [shape: f32[13,384], index: 3, kind: input, shape index: {}]   ;;  %s2306_s4 = inlined_call_operand.vmem [shape: f32[32,128], index: 4, kind: output, shape index: {}, may-alias: {1,4}]  }
   0x1   :  { %s19_s16 = sshll.u32 %s1949_s15, 4  ;;  %s1925_s19 = scalar_lea.hbm %s2304_s2, 9216  ;;  %s20_s16 = int_to_ptr.vmem [resolvable:$true] %s19_s16 }
   0x2   :  { %p1926_p0 = scmp.ne.s32.totalorder %s2304_s2, %s1925_s19  ;;  %p1929_p1 = scmp.lt.u32.totalorder %s1925_s19, %s2304_s2 }
   0x4   :  { %p1931_p2 = pnand %p1929_p1, %p1926_p0 }
   0x6   :  { %1934 = shalt.err (!%p1931_p2)
}
   0x7   :  { %s1935_s24 = scalar_lea.vmem %s20_s16, 9216  ;;  %p1940_p4 = scmp.lt.s32.totalorder %s20_s16, %s20_s16 }
   0x8   :  { %p1936_p3 = scmp.ne.s32.totalorder %s20_s16, %s1935_s24  ;;  %p1941_p5 = scmp.lt.s32.totalorder %s1935_s24, %s1935_s24 }
   0xa   :  { %p1942_p6 = por %p1941_p5, %p1940_p4 }
   0xc   :  { %p1943_p7 = pnand %p1942_p6, %p1936_p3 }
   0xe   :  { %1946 = shalt.err (!%p1943_p7)
}
   0xf   :  { %s1950_s25 = smov 576   ;;  %s1951_s26 = smov 36  }
  0x10   :  { %25 = dma.hbm_to_vmem [thread:$0]  %s2304_s2, 9216, %s20_s16, [#allocation3], %s1950_s25, %s1950_s25, %s1951_s26  }
  0x11   :  { %1947 = dma.done.wait [#allocation3], 9216  }
  0x12   :  { %1948 = vsyncadd [#allocation3], 4294958080  ;;  %v32_v0 = vlaneseq  ;;  %v1998_v2 = vld [vmem:[%s2302_s0] sm:$0xff]  ;;  %v2003_v3 = vld [vmem:[%s2302_s0 + $0x10] sm:$0xff] }
  0x13   :  { %v2008_v4 = vld [vmem:[%s2302_s0 + $0x8] sm:$0xff]  ;;  %v2022_v8 = vld [vmem:[%s2302_s0 + $0x18] sm:$0xff]  ;;  %v1745_v10 = vld [vmem:[#allocation2] ss:$36 sps:$4 sm:$0xff]  }
  0x14   :  { %v1992_v1 = vand.u32 127, %v32_v0  ;;  %1614 = vmatprep.subr.bf16.mxu0 %v1745_v10  ;;  %v1746_v31 = vld [vmem:[#allocation2 + $0x48] ss:$36 sps:$4 sm:$0xff]   ;;  %v1747_v32 = vld [vmem:[#allocation2 + $0x90] ss:$36 sps:$4 sm:$0xff]  }
  0x15   :  { %1615 = vmatpush3.bf16.msra.mxu0 %v1745_v10  ;;  %v1748_v33 = vld [vmem:[#allocation2 + $0xd8] ss:$36 sps:$4 sm:$0xff]   ;;  %v1749_v34 = vld [vmem:[#allocation2 + $0x120] ss:$36 sps:$4 sm:$0xff]   ;;  %v1750_v35 = vld [vmem:[#allocation2 + $0x168] ss:$36 sps:$4 sm:$0xff]  }
  0x16   :  { %vm34_vm0 = vcmp.lt.s32.totalorder %v1992_v1, 32  ;;  %1616 = vmatprep.subr.bf16.mxu0 %v1746_v31  ;;  %v1751_v36 = vld [vmem:[#allocation2 + $0x1b0] ss:$36 sps:$4 sm:$0xff]   ;;  %v1752_v37 = vld [vmem:[#allocation2 + $0x1f8] ss:$36 sps:$4 sm:$0xff]   ;;  %vm35_vm1 = vcmp.lt.s32.totalorder %v1992_v1, 64 }
  0x17   :  { %v45_v5 = vsel %vm34_vm0, %v1998_v2, 0.0  ;;  %v47_v6 = vsel %vm34_vm0, %v2003_v3, 0.0  ;;  %v46_v7 = vsel %vm34_vm0, %v2008_v4, 0.0  ;;  %v48_v9 = vsel %vm34_vm0, %v2022_v8, 0.0  ;;  %v43_v52 = vld [vmem:[%s2305_s3] ss:$0 sm:$0xff] }
  0x18   :  { %49 = vadd.xlane.f32.xlu0 %v45_v5  ;;  %53 = vadd.xlane.f32.xlu1 %v47_v6  ;;  %v44_v57 = vld [vmem:[%s2305_s3 + $0x1] ss:$0 sm:$0xff]  ;;  %vm36_vm2 = vcmp.ge.s32.totalorder %v1992_v1, 32  ;;  %vm37_vm3 = vcmp.lt.s32.totalorder %v1992_v1, 40 }
  0x19   :  { %1617 = vmatpush3.bf16.msra.mxu0 %v1746_v31  ;;  %vm2219_vm5 = vmand %vm36_vm2, %vm37_vm3  ;;  %vm1460_vm2 = vcmp.eq.s32.totalorder %v1992_v1, 65 }
  0x1a   :  { %1618 = vmatprep.subr.bf16.mxu0 %v1747_v32 }
  0x1c   :  { %51 = vadd.xlane.f32.xlu0 %v46_v7  ;;  %55 = vadd.xlane.f32.xlu1 %v48_v9 }
  0x1d   :  { %1619 = vmatpush3.bf16.msra.mxu0 %v1747_v32 }
  0x1e   :  { %1620 = vmatprep.subr.bf16.mxu0 %v1748_v33 }
  0x21   :  { %1621 = vmatpush3.bf16.msra.mxu0 %v1748_v33 }
  0x22   :  { %1622 = vmatprep.subr.bf16.mxu0 %v1749_v34 }
  0x25   :  { %1623 = vmatpush3.bf16.msra.mxu0 %v1749_v34 }
  0x26   :  { %1624 = vmatprep.subr.bf16.mxu0 %v1750_v35 }
  0x29   :  { %1625 = vmatpush3.bf16.msra.mxu0 %v1750_v35 }
  0x2a   :  { %1626 = vmatprep.subr.bf16.mxu0 %v1751_v36 }
  0x2d   :  { %1627 = vmatpush3.bf16.msra.mxu0 %v1751_v36 }
  0x2e   :  { %1628 = vmatprep.subr.bf16.mxu0 %v1752_v37 }
  0x31   :  { %1629 = vmatpush3.bf16.msra.mxu0 %v1752_v37 }
  0xa5   :  { %v50_v11 = vpop.xlane.xlu0 %49  ;;  %v54_v12 = vpop.xlane.xlu1 %53 }
  0xa6   :  { %v57_v13 = vmul.f32 0.03125, %v50_v11  ;;  %v59_v14 = vmul.f32 0.03125, %v54_v12  ;;  %v123_v12 = vld [vmem:[%s2305_s3 + $0x2] ss:$0 sm:$0xff] }
  0xa8   :  { %v61_v15 = vsub.f32 %v45_v5, %v57_v13  ;;  %v63_v16 = vsub.f32 %v47_v6, %v59_v14 }
  0xa9   :  { %v52_v17 = vpop.xlane.xlu0 %51  ;;  %v56_v18 = vpop.xlane.xlu1 %55 }
  0xaa   :  { %v58_v19 = vmul.f32 0.03125, %v52_v17  ;;  %v60_v20 = vmul.f32 0.03125, %v56_v18  ;;  %v65_v21 = vsel %vm34_vm0, %v61_v15, 0.0  ;;  %v67_v22 = vsel %vm34_vm0, %v63_v16, 0.0 }
  0xab   :  { %v69_v23 = vmul.f32 %v65_v21, %v65_v21  ;;  %v71_v26 = vmul.f32 %v67_v22, %v67_v22 }
  0xac   :  { %v62_v24 = vsub.f32 %v46_v7, %v58_v19  ;;  %v64_v25 = vsub.f32 %v48_v9, %v60_v20 }
  0xad   :  { %73 = vadd.xlane.f32.xlu0 %v69_v23 }
  0xae   :  { %v66_v27 = vsel %vm34_vm0, %v62_v24, 0.0  ;;  %v68_v28 = vsel %vm34_vm0, %v64_v25, 0.0 }
  0xaf   :  { %v70_v29 = vmul.f32 %v66_v27, %v66_v27  ;;  %v72_v30 = vmul.f32 %v68_v28, %v68_v28 }
  0xb1   :  { %77 = vadd.xlane.f32.xlu0 %v71_v26  ;;  %75 = vadd.xlane.f32.xlu1 %v70_v29  ;;  %v1753_v29 = vld [vmem:[#allocation2 + $0x4] ss:$36 sps:$4 sm:$0xff]  }
  0xb2   :  { %1634 = vmatprep.subr.bf16.mxu1 %v1753_v29 }
  0xb3   :  { %1635 = vmatpush3.bf16.msra.mxu1 %v1753_v29 }
  0xb5   :  { %79 = vadd.xlane.f32.xlu1 %v72_v30 }
 0x13a   :  { %v74_v38 = vpop.xlane.xlu0 %73 }
 0x13b   :  { %v81_v39 = vmul.f32 0.03125, %v74_v38 }
 0x13d   :  { %v85_v40 = vadd.f32 1e-05, %v81_v39 }
 0x13e   :  { %v76_v41 = vpop.xlane.xlu1 %75  ;;  %v78_v42 = vpop.xlane.xlu0 %77 }
 0x13f   :  { %1833 = vrsqrt.f32 %v85_v40  ;;  %v82_v43 = vmul.f32 0.03125, %v76_v41  ;;  %v83_v44 = vmul.f32 0.03125, %v78_v42 }
 0x141   :  { %v86_v45 = vadd.f32 1e-05, %v82_v43  ;;  %v87_v46 = vadd.f32 1e-05, %v83_v44 }
 0x142   :  { %v80_v47 = vpop.xlane.xlu1 %79 }
 0x143   :  { %1835 = vrsqrt.f32 %v86_v45  ;;  %v84_v48 = vmul.f32 0.03125, %v80_v47 }
 0x144   :  { %1837 = vrsqrt.f32 %v87_v46 }
 0x145   :  { %v88_v49 = vadd.f32 1e-05, %v84_v48 }
 0x147   :  { %1839 = vrsqrt.f32 %v88_v49 }
 0x149   :  { %v1834_v50 = vpop.eup %1833 }
 0x14a   :  { %v93_v51 = vmul.f32 %v1834_v50, %v65_v21  ;;  %v1754_v50 = vld [vmem:[#allocation2 + $0x4c] ss:$36 sps:$4 sm:$0xff]  }
 0x14b   :  { %1636 = vmatprep.subr.bf16.mxu1 %v1754_v50 }
 0x14c   :  { %v97_v56 = vmul.f32 %v93_v51, %v43_v52  ;;  %1637 = vmatpush3.bf16.msra.mxu1 %v1754_v50  ;;  %v1755_v51 = vld [vmem:[#allocation2 + $0x94] ss:$36 sps:$4 sm:$0xff]  }
 0x14d   :  { %v1836_v53 = vpop.eup %1835  ;;  %1638 = vmatprep.subr.bf16.mxu1 %v1755_v51  ;;  %v1763_v50 = vld [vmem:[#allocation2 + $0x10] ss:$36 sps:$4 sm:$0xff]  }
 0x14e   :  { %v1838_v54 = vpop.eup %1837  ;;  %v94_v55 = vmul.f32 %v1836_v53, %v66_v27  ;;  %v101_v61 = vadd.f32 %v97_v56, %v44_v57  ;;  %v1757_v53 = vld [vmem:[#allocation2 + $0x124] ss:$36 sps:$4 sm:$0xff]   ;;  %v1760_v56 = vld [vmem:[#allocation2 + $0x1fc] ss:$36 sps:$4 sm:$0xff]   ;;  %679 = vmatprep.subr.bf16.mxu0 %v1763_v50 }
 0x14f   :  { %v95_v58 = vmul.f32 %v1838_v54, %v67_v22  ;;  %v1758_v54 = vld [vmem:[#allocation2 + $0x16c] ss:$36 sps:$4 sm:$0xff]  }
 0x150   :  { %v98_v59 = vmul.f32 %v94_v55, %v43_v52  ;;  %1639 = vmatpush3.bf16.msra.mxu1 %v1755_v51  ;;  %v1759_v55 = vld [vmem:[#allocation2 + $0x1b4] ss:$36 sps:$4 sm:$0xff]  }
 0x151   :  { %v1840_v60 = vpop.eup %1839  ;;  %v99_v5 = vmul.f32 %v95_v58, %v43_v52  ;;  %v1766_v51 = vld [vmem:[#allocation2 + $0x58] ss:$36 sps:$4 sm:$0xff]  }
 0x152   :  { %v102_v62 = vadd.f32 %v98_v59, %v44_v57  ;;  %v96_v63 = vmul.f32 %v1840_v60, %v68_v28 }
 0x153   :  { %v103_v9 = vadd.f32 %v99_v5, %v44_v57 }
 0x154   :  { %v105_v6 = vpack.c.bf16 %v102_v62, %v101_v61  ;;  %v100_v7 = vmul.f32 %v96_v63, %v43_v52  ;;  %v1756_v52 = vld [vmem:[#allocation2 + $0xdc] ss:$36 sps:$4 sm:$0xff]  }
 0x155   :  { %1640 = vmatprep.subr.bf16.mxu1 %v1756_v52 }
 0x156   :  { %1630 = vmatprep.mubr.bf16.mxu0 %v105_v6  ;;  %v104_v10 = vadd.f32 %v100_v7, %v44_v57  ;;  %1641 = vmatpush3.bf16.msra.mxu1 %v1756_v52  ;;  %v1767_v52 = vld [vmem:[#allocation2 + $0x14] ss:$36 sps:$4 sm:$0xff]  }
 0x157   :  { %1642 = vmatprep.subr.bf16.mxu1 %v1757_v53 }
 0x158   :  { %v106_v11 = vpack.c.bf16 %v104_v10, %v103_v9 }
 0x15a   :  { %1631 = vmatmul.mubr.bf16.vlgmr.msra.gmra.mrb[0].mxu0 %v106_v11  ;;  %1643 = vmatpush3.bf16.msra.mxu1 %v1757_v53  ;;  %v1764_v53 = vld [vmem:[#allocation2 + $0x54] ss:$36 sps:$4 sm:$0xff]  }
 0x15b   :  { %1644 = vmatprep.subr.bf16.mxu1 %v1758_v54 }
 0x15e   :  { %1645 = vmatpush3.bf16.msra.mxu1 %v1758_v54 }
 0x15f   :  { %1646 = vmatprep.subr.bf16.mxu1 %v1759_v55 }
 0x162   :  { %1647 = vmatpush3.bf16.msra.mxu1 %v1759_v55 }
 0x163   :  { %1648 = vmatprep.subr.bf16.mxu1 %v1760_v56 }
 0x166   :  { %1649 = vmatpush3.bf16.msra.mxu1 %v1760_v56 }
 0x167   :  { %1654 = vmatprep.subr.bf16.mxu1 %v1767_v52 }
 0x22d   :  { %v1632_v13 = vpop.f32.mrb[0].mxu0 }
 0x22e   :  { %v206_v14 = vpop.f32.mrb[1].mxu0  ;;  %v215_v15 = vadd.f32 %v1632_v13, %v123_v12 }
 0x22f   :  { %v207_v16 = vadd.f32 %v206_v14, %v123_v12  ;;  %v1633_v17 = vpop.f32.mrb[2].mxu0 }
 0x230   :  { %v209_v18 = vpop.f32.mrb[3].mxu0  ;;  %v218_v20 = vadd.f32 %v1633_v17, %v123_v12  ;;  %v223_v22 = vmax.f32 %v215_v15, 0.0 }
 0x231   :  { %v221_v19 = vmax.f32 %v207_v16, 0.0  ;;  %v210_v21 = vadd.f32 %v209_v18, %v123_v12  ;;  %v225_v12 = vld [vmem:[%s2305_s3 + $0x3] ss:$0 sm:$0xff]  ;;  %v226_v18 = vld [vmem:[%s2305_s3 + $0x4] ss:$0 sm:$0xff] }
 0x232   :  { %v224_v25 = vmax.f32 %v218_v20, 0.0  ;;  %v229_v27 = vsel %vm35_vm1, %v223_v22, 0.0 }
 0x233   :  { %v222_v23 = vmax.f32 %v210_v21, 0.0  ;;  %v227_v24 = vsel %vm35_vm1, %v221_v19, 0.0 }
 0x234   :  { %231 = vadd.xlane.f32.xlu0 %v227_v24  ;;  %v230_v28 = vsel %vm35_vm1, %v224_v25, 0.0 }
 0x235   :  { %v228_v26 = vsel %vm35_vm1, %v222_v23, 0.0 }
 0x236   :  { %233 = vadd.xlane.f32.xlu1 %v228_v26 }
 0x238   :  { %235 = vadd.xlane.f32.xlu0 %v229_v27 }
 0x23a   :  { %237 = vadd.xlane.f32.xlu1 %v230_v28 }
 0x2c1   :  { %v232_v30 = vpop.xlane.xlu0 %231 }
 0x2c2   :  { %v239_v31 = vmul.f32 0.015625, %v232_v30 }
 0x2c3   :  { %v234_v32 = vpop.xlane.xlu1 %233 }
 0x2c4   :  { %v243_v33 = vsub.f32 %v227_v24, %v239_v31  ;;  %v240_v34 = vmul.f32 0.015625, %v234_v32  ;;  %v305_v31 = vld [vmem:[%s2305_s3 + $0x5] ss:$0 sm:$0xff] }
 0x2c5   :  { %v236_v35 = vpop.xlane.xlu0 %235 }
 0x2c6   :  { %v244_v36 = vsub.f32 %v228_v26, %v240_v34  ;;  %v241_v37 = vmul.f32 0.015625, %v236_v35  ;;  %v247_v38 = vsel %vm35_vm1, %v243_v33, 0.0 }
 0x2c7   :  { %v238_v39 = vpop.xlane.xlu1 %237  ;;  %v251_v40 = vmul.f32 %v247_v38, %v247_v38 }
 0x2c8   :  { %v245_v41 = vsub.f32 %v229_v27, %v241_v37  ;;  %v242_v42 = vmul.f32 0.015625, %v238_v39  ;;  %v248_v43 = vsel %vm35_vm1, %v244_v36, 0.0 }
 0x2c9   :  { %255 = vadd.xlane.f32.xlu0 %v251_v40  ;;  %v252_v44 = vmul.f32 %v248_v43, %v248_v43 }
 0x2ca   :  { %v246_v45 = vsub.f32 %v230_v28, %v242_v42  ;;  %v249_v46 = vsel %vm35_vm1, %v245_v41, 0.0 }
 0x2cb   :  { %257 = vadd.xlane.f32.xlu1 %v252_v44  ;;  %v253_v47 = vmul.f32 %v249_v46, %v249_v46 }
 0x2cc   :  { %v250_v48 = vsel %vm35_vm1, %v246_v45, 0.0 }
 0x2cd   :  { %259 = vadd.xlane.f32.xlu0 %v253_v47  ;;  %v254_v49 = vmul.f32 %v250_v48, %v250_v48 }
 0x2cf   :  { %261 = vadd.xlane.f32.xlu1 %v254_v49  ;;  %v1761_v49 = vld [vmem:[#allocation2 + $0xc] ss:$36 sps:$4 sm:$0xff]  }
 0x2d0   :  { %680 = vmatpush1.bf16.msra.mxu0 %v1761_v49 }
 0x2d1   :  { %681 = vmatprep.subr.bf16.mxu0 %v1766_v51 }
 0x2d4   :  { %682 = vmatpush1.bf16.msra.mxu0 %v1764_v53  ;;  %v408_v53 = vld [vmem:[%s2305_s3 + $0x7] ss:$0 sm:$0xff] }
 0x356   :  { %v256_v57 = vpop.xlane.xlu0 %255 }
 0x357   :  { %v263_v58 = vmul.f32 0.015625, %v256_v57 }
 0x358   :  { %v258_v59 = vpop.xlane.xlu1 %257 }
 0x359   :  { %v267_v60 = vadd.f32 1e-05, %v263_v58  ;;  %v264_v61 = vmul.f32 0.015625, %v258_v59 }
 0x35a   :  { %v260_v62 = vpop.xlane.xlu0 %259 }
 0x35b   :  { %1841 = vrsqrt.f32 %v267_v60  ;;  %v268_v63 = vadd.f32 1e-05, %v264_v61  ;;  %v265_v5 = vmul.f32 0.015625, %v260_v62 }
 0x35c   :  { %v262_v6 = vpop.xlane.xlu1 %261 }
 0x35d   :  { %1843 = vrsqrt.f32 %v268_v63  ;;  %v269_v7 = vadd.f32 1e-05, %v265_v5  ;;  %v266_v9 = vmul.f32 0.015625, %v262_v6 }
 0x35f   :  { %1845 = vrsqrt.f32 %v269_v7  ;;  %v270_v10 = vadd.f32 1e-05, %v266_v9 }
 0x361   :  { %1847 = vrsqrt.f32 %v270_v10 }
 0x365   :  { %v1842_v11 = vpop.eup %1841 }
 0x366   :  { %v275_v13 = vmul.f32 %v1842_v11, %v247_v38 }
 0x367   :  { %v1844_v14 = vpop.eup %1843 }
 0x368   :  { %v276_v15 = vmul.f32 %v1844_v14, %v248_v43  ;;  %v279_v16 = vmul.f32 %v275_v13, %v225_v12 }
 0x369   :  { %v1846_v17 = vpop.eup %1845 }
 0x36a   :  { %v280_v19 = vmul.f32 %v276_v15, %v225_v12  ;;  %v277_v20 = vmul.f32 %v1846_v17, %v249_v46  ;;  %v283_v22 = vadd.f32 %v279_v16, %v226_v18  ;;  %v1770_v16 = vld [vmem:[#allocation2 + $0xa0] ss:$36 sps:$4 sm:$0xff]  }
 0x36b   :  { %v1848_v21 = vpop.eup %1847  ;;  %v1771_v17 = vld [vmem:[#allocation2 + $0x5c] ss:$36 sps:$4 sm:$0xff]   ;;  %683 = vmatprep.subr.bf16.mxu0 %v1770_v16 }
 0x36c   :  { %v284_v23 = vadd.f32 %v280_v19, %v226_v18  ;;  %v278_v24 = vmul.f32 %v1848_v21, %v250_v48  ;;  %v281_v25 = vmul.f32 %v277_v20, %v225_v12  ;;  %v1952_v48 = vmov 40   ;;  %v1774_v19 = vld [vmem:[#allocation2 + $0xe8] ss:$36 sps:$4 sm:$0xff]  }
 0x36d   :  { %1744 = vset.pattern.permute.xlu1 %v1952_v48  ;;  %1743 = vset.pattern.permute.xlu0 %v1952_v48  ;;  %v1775_v20 = vld [vmem:[#allocation2 + $0xa4] ss:$36 sps:$4 sm:$0xff]  }
 0x36e   :  { %v287_v26 = vpack.c.bf16 %v284_v23, %v283_v22  ;;  %v282_v27 = vmul.f32 %v278_v24, %v225_v12  ;;  %v285_v28 = vadd.f32 %v281_v25, %v226_v18  ;;  %v1772_v21 = vld [vmem:[#allocation2 + $0xe4] ss:$36 sps:$4 sm:$0xff]   ;;  %v1778_v22 = vld [vmem:[#allocation2 + $0x130] ss:$36 sps:$4 sm:$0xff]   ;;  %v1782_v25 = vld [vmem:[#allocation2 + $0x178] ss:$36 sps:$4 sm:$0xff]  }
 0x36f   :  { %v1779_v23 = vld [vmem:[#allocation2 + $0xec] ss:$36 sps:$4 sm:$0xff]  }
 0x370   :  { %1650 = vmatprep.mubr.bf16.mxu1 %v287_v26  ;;  %v286_v29 = vadd.f32 %v282_v27, %v226_v18  ;;  %v1768_v18 = vld [vmem:[#allocation2 + $0x9c] ss:$36 sps:$4 sm:$0xff]   ;;  %v1776_v24 = vld [vmem:[#allocation2 + $0x12c] ss:$36 sps:$4 sm:$0xff]   ;;  %v1783_v26 = vld [vmem:[#allocation2 + $0x134] ss:$36 sps:$4 sm:$0xff]  }
 0x371   :  { %684 = vmatpush1.bf16.msra.mxu0 %v1768_v18  ;;  %v1780_v27 = vld [vmem:[#allocation2 + $0x174] ss:$36 sps:$4 sm:$0xff]   ;;  %v1803_v18 = vld [vmem:[#allocation2 + $0x68] ss:$36 sps:$4 sm:$0xff]  }
 0x372   :  { %v288_v30 = vpack.c.bf16 %v286_v29, %v285_v28  ;;  %685 = vmatprep.subr.bf16.mxu0 %v1774_v19  ;;  %v1786_v28 = vld [vmem:[#allocation2 + $0x1c0] ss:$36 sps:$4 sm:$0xff]  }
 0x373   :  { %v1787_v29 = vld [vmem:[#allocation2 + $0x17c] ss:$36 sps:$4 sm:$0xff]  }
 0x374   :  { %1651 = vmatmul.mubr.bf16.vlgmr.msra.gmra.mrb[0].mxu1 %v288_v30  ;;  %v1784_v30 = vld [vmem:[#allocation2 + $0x1bc] ss:$36 sps:$4 sm:$0xff]  }
 0x375   :  { %1655 = vmatpush3.bf16.msra.mxu1 %v1767_v52  ;;  %686 = vmatpush1.bf16.msra.mxu0 %v1772_v21  ;;  %v1806_v21 = vld [vmem:[#allocation2 + $0xf4] ss:$36 sps:$4 sm:$0xff]  }
 0x376   :  { %1656 = vmatprep.subr.bf16.mxu1 %v1771_v17  ;;  %687 = vmatprep.subr.bf16.mxu0 %v1778_v22  ;;  %v1807_v22 = vld [vmem:[#allocation2 + $0xb0] ss:$36 sps:$4 sm:$0xff]  }
 0x379   :  { %1657 = vmatpush3.bf16.msra.mxu1 %v1771_v17  ;;  %688 = vmatpush1.bf16.msra.mxu0 %v1776_v24  ;;  %v1802_v17 = vld [vmem:[#allocation2 + $0xac] ss:$36 sps:$4 sm:$0xff]   ;;  %v1810_v24 = vld [vmem:[#allocation2 + $0x13c] ss:$36 sps:$4 sm:$0xff]  }
 0x37a   :  { %1658 = vmatprep.subr.bf16.mxu1 %v1775_v20  ;;  %689 = vmatprep.subr.bf16.mxu0 %v1782_v25  ;;  %v1811_v25 = vld [vmem:[#allocation2 + $0xf8] ss:$36 sps:$4 sm:$0xff]  }
 0x37d   :  { %1659 = vmatpush3.bf16.msra.mxu1 %v1775_v20  ;;  %690 = vmatpush1.bf16.msra.mxu0 %v1780_v27  ;;  %v1800_v20 = vld [vmem:[#allocation2 + $0xa8] ss:$36 sps:$4 sm:$0xff]  }
 0x37e   :  { %1660 = vmatprep.subr.bf16.mxu1 %v1779_v23  ;;  %691 = vmatprep.subr.bf16.mxu0 %v1786_v28  ;;  %v1814_v27 = vld [vmem:[#allocation2 + $0x184] ss:$36 sps:$4 sm:$0xff]  }
 0x37f   :  { %v1815_v28 = vld [vmem:[#allocation2 + $0x140] ss:$36 sps:$4 sm:$0xff]  }
 0x381   :  { %1661 = vmatpush3.bf16.msra.mxu1 %v1779_v23  ;;  %692 = vmatpush1.bf16.msra.mxu0 %v1784_v30  ;;  %v1804_v23 = vld [vmem:[#allocation2 + $0xf0] ss:$36 sps:$4 sm:$0xff]  }
 0x382   :  { %1662 = vmatprep.subr.bf16.mxu1 %v1783_v26  ;;  %v1818_v30 = vld [vmem:[#allocation2 + $0x1cc] ss:$36 sps:$4 sm:$0xff]  }
 0x385   :  { %1663 = vmatpush3.bf16.msra.mxu1 %v1783_v26  ;;  %v1808_v26 = vld [vmem:[#allocation2 + $0x138] ss:$36 sps:$4 sm:$0xff]  }
 0x386   :  { %1664 = vmatprep.subr.bf16.mxu1 %v1787_v29 }
 0x389   :  { %1665 = vmatpush3.bf16.msra.mxu1 %v1787_v29  ;;  %v1812_v29 = vld [vmem:[#allocation2 + $0x180] ss:$36 sps:$4 sm:$0xff]  }
 0x447   :  { %v1652_v32 = vpop.f32.mrb[0].mxu1 }
 0x448   :  { %v388_v33 = vpop.f32.mrb[1].mxu1  ;;  %v397_v34 = vadd.f32 %v1652_v32, %v305_v31  ;;  %v1788_v32 = vld [vmem:[#allocation2 + $0x204] ss:$36 sps:$4 sm:$0xff]  }
 0x449   :  { %v389_v35 = vadd.f32 %v388_v33, %v305_v31  ;;  %v1653_v36 = vpop.f32.mrb[2].mxu1  ;;  %v1795_v33 = vld [vmem:[#allocation2 + $0x1c] ss:$36 sps:$4 sm:$0xff]  }
 0x44a   :  { %v391_v37 = vpop.f32.mrb[3].mxu1  ;;  %v400_v39 = vadd.f32 %v1653_v36, %v305_v31  ;;  %v405_v41 = vmax.f32 %v397_v34, 0.0 }
 0x44b   :  { %v403_v38 = vmax.f32 %v389_v35, 0.0  ;;  %v392_v40 = vadd.f32 %v391_v37, %v305_v31  ;;  %v1791_v31 = vld [vmem:[#allocation2 + $0x1c4] ss:$36 sps:$4 sm:$0xff]  }
 0x44c   :  { %v406_v44 = vmax.f32 %v400_v39, 0.0  ;;  %v411_v46 = vsel %vm35_vm1, %v405_v41, 0.0  ;;  %1666 = vmatprep.subr.bf16.mxu1 %v1791_v31 }
 0x44d   :  { %v404_v42 = vmax.f32 %v392_v40, 0.0  ;;  %v409_v43 = vsel %vm35_vm1, %v403_v38, 0.0  ;;  %1667 = vmatpush3.bf16.msra.mxu1 %v1791_v31 }
 0x44e   :  { %413 = vadd.xlane.f32.xlu0 %v409_v43  ;;  %v412_v47 = vsel %vm35_vm1, %v406_v44, 0.0 }
 0x44f   :  { %v410_v45 = vsel %vm35_vm1, %v404_v42, 0.0 }
 0x450   :  { %415 = vadd.xlane.f32.xlu1 %v410_v45 }
 0x452   :  { %417 = vadd.xlane.f32.xlu0 %v411_v46 }
 0x454   :  { %419 = vadd.xlane.f32.xlu1 %v412_v47 }
 0x4db   :  { %v414_v54 = vpop.xlane.xlu0 %413 }
 0x4dc   :  { %v421_v55 = vmul.f32 0.015625, %v414_v54 }
 0x4dd   :  { %v416_v56 = vpop.xlane.xlu1 %415 }
 0x4de   :  { %v425_v57 = vsub.f32 %v409_v43, %v421_v55  ;;  %v422_v58 = vmul.f32 0.015625, %v416_v56 }
 0x4df   :  { %v418_v59 = vpop.xlane.xlu0 %417 }
 0x4e0   :  { %v426_v60 = vsub.f32 %v410_v45, %v422_v58  ;;  %v423_v61 = vmul.f32 0.015625, %v418_v59  ;;  %v2080_v62 = vsel %vm35_vm1, %v425_v57, 0.0 }
 0x4e1   :  { %v420_v63 = vpop.xlane.xlu1 %419  ;;  %v433_v5 = vmul.f32 %v2080_v62, %v2080_v62 }
 0x4e2   :  { %v427_v6 = vsub.f32 %v411_v46, %v423_v61  ;;  %v424_v7 = vmul.f32 0.015625, %v420_v63  ;;  %v2086_v9 = vsel %vm35_vm1, %v426_v60, 0.0  ;;  %v470_v61 = vld [vmem:[%s2303_s1 + $0x8] sm:$0xff] }
 0x4e3   :  { %437 = vadd.xlane.f32.xlu0 %v433_v5  ;;  %v434_v10 = vmul.f32 %v2086_v9, %v2086_v9  ;;  %v1793_v5 = vld [vmem:[#allocation2 + $0x18] ss:$36 sps:$4 sm:$0xff]  }
 0x4e4   :  { %v428_v11 = vsub.f32 %v412_v47, %v424_v7  ;;  %v2092_v12 = vsel %vm35_vm1, %v427_v6, 0.0  ;;  %v407_v47 = vld [vmem:[%s2305_s3 + $0x6] ss:$0 sm:$0xff] }
 0x4e5   :  { %439 = vadd.xlane.f32.xlu1 %v434_v10  ;;  %v435_v13 = vmul.f32 %v2092_v12, %v2092_v12  ;;  %v1798_v7 = vld [vmem:[#allocation2 + $0x64] ss:$36 sps:$4 sm:$0xff]  }
 0x4e6   :  { %v2098_v14 = vsel %vm35_vm1, %v428_v11, 0.0 }
 0x4e7   :  { %441 = vadd.xlane.f32.xlu0 %v435_v13  ;;  %v436_v15 = vmul.f32 %v2098_v14, %v2098_v14 }
 0x4e9   :  { %443 = vadd.xlane.f32.xlu1 %v436_v15  ;;  %v1796_v15 = vld [vmem:[#allocation2 + $0x60] ss:$36 sps:$4 sm:$0xff]  }
 0x4fa   :  { %480 = vperm.xlu1 %1744, %v2008_v4   ;;  %v1790_v4 = vld [vmem:[#allocation2 + $0x208] ss:$36 sps:$4 sm:$0xff]  }
 0x4fb   :  { %693 = vmatprep.subr.bf16.mxu0 %v1790_v4  ;;  %v1819_v4 = vld [vmem:[#allocation2 + $0x188] ss:$36 sps:$4 sm:$0xff]  }
 0x4fc   :  { %694 = vmatpush1.bf16.msra.mxu0 %v1788_v32  ;;  %v1816_v32 = vld [vmem:[#allocation2 + $0x1c8] ss:$36 sps:$4 sm:$0xff]  }
 0x4fd   :  { %475 = vperm.xlu0 %1743, %v1998_v2   ;;  %v1792_v2 = vld [vmem:[#allocation2 + $0x20c] ss:$36 sps:$4 sm:$0xff]   ;;  %959 = vmatprep.subr.bf16.mxu0 %v1795_v33 }
 0x4fe   :  { %485 = vperm.xlu1 %1744, %v2003_v3   ;;  %v1953_v3 = vmov 0   ;;  %1668 = vmatprep.subr.bf16.mxu1 %v1792_v2  ;;  %v1823_v33 = vld [vmem:[#allocation2 + $0x1d0] ss:$36 sps:$4 sm:$0xff]  }
 0x4ff   :  { %711 = vmatprep.mubr.bf16.mxu0 %v1953_v3  ;;  %1669 = vmatpush3.bf16.msra.mxu1 %v1792_v2  ;;  %v1822_v2 = vld [vmem:[#allocation2 + $0x214] ss:$36 sps:$4 sm:$0xff]  }
 0x502   :  { %490 = vperm.xlu1 %1744, %v2022_v8   ;;  %v1799_v8 = vld [vmem:[#allocation2 + $0x20] ss:$36 sps:$4 sm:$0xff]  }
 0x503   :  { %1674 = vmatprep.subr.bf16.mxu1 %v1799_v8 }
 0x570   :  { %v438_v34 = vpop.xlane.xlu0 %437 }
 0x571   :  { %v445_v35 = vmul.f32 0.015625, %v438_v34  ;;  %v1824_v34 = vld [vmem:[#allocation2 + $0x218] ss:$36 sps:$4 sm:$0xff]  }
 0x572   :  { %v440_v36 = vpop.xlane.xlu1 %439 }
 0x573   :  { %v449_v37 = vadd.f32 1e-05, %v445_v35  ;;  %v446_v38 = vmul.f32 0.015625, %v440_v36  ;;  %v471_v35 = vld [vmem:[%s2303_s1 + $0x10] sm:$0xff]  ;;  %v472_v36 = vld [vmem:[%s2303_s1 + $0x18] sm:$0xff] }
 0x574   :  { %v442_v39 = vpop.xlane.xlu0 %441 }
 0x575   :  { %1849 = vrsqrt.f32 %v449_v37  ;;  %v450_v40 = vadd.f32 1e-05, %v446_v38  ;;  %v447_v41 = vmul.f32 0.015625, %v442_v39 }
 0x576   :  { %v444_v42 = vpop.xlane.xlu1 %443 }
 0x577   :  { %1851 = vrsqrt.f32 %v450_v40  ;;  %v451_v43 = vadd.f32 1e-05, %v447_v41  ;;  %v448_v44 = vmul.f32 0.015625, %v444_v42 }
 0x579   :  { %1853 = vrsqrt.f32 %v451_v43  ;;  %v452_v45 = vadd.f32 1e-05, %v448_v44 }
 0x57a   :  { %v481_v10 = vpop.permute.xlu1 %480 }
 0x57b   :  { %1855 = vrsqrt.f32 %v452_v45  ;;  %v2123_v11 = vmul.f32 %v481_v10, %v470_v61  ;;  %v537_v45 = vshrl.u32 %v32_v0, 7 }
 0x57c   :  { %v476_v63 = vpop.permute.xlu0 %475 }
 0x57e   :  { %v486_v31 = vpop.permute.xlu1 %485 }
 0x57f   :  { %v1850_v46 = vpop.eup %1849  ;;  %v2137_v38 = vmul.f32 %v486_v31, %v471_v35 }
 0x580   :  { %v457_v48 = vmul.f32 %v1850_v46, %v2080_v62  ;;  %v469_v62 = vld [vmem:[%s2303_s1] sm:$0xff]  ;;  %v538_v46 = vsub.s32 0, %v537_v45 }
 0x581   :  { %v1852_v49 = vpop.eup %1851 }
 0x582   :  { %v458_v50 = vmul.f32 %v1852_v49, %v2086_v9  ;;  %v461_v51 = vmul.f32 %v457_v48, %v407_v47  ;;  %v491_v37 = vpop.permute.xlu1 %490  ;;  %v542_v48 = vsub.s32 1, %v537_v45 }
 0x583   :  { %v1854_v52 = vpop.eup %1853  ;;  %v2139_v39 = vmul.f32 %v491_v37, %v472_v36 }
 0x584   :  { %v459_v54 = vmul.f32 %v1854_v52, %v2092_v12  ;;  %v462_v55 = vmul.f32 %v458_v50, %v407_v47  ;;  %v465_v58 = vadd.f32 %v461_v51, %v408_v53  ;;  %v2125_v12 = vmul.f32 %v476_v63, %v469_v62 }
 0x585   :  { %v1856_v56 = vpop.eup %1855  ;;  %v500_v40 = vpack.c.bf16 %v2139_v39, %v2137_v38 }
 0x586   :  { %v460_v57 = vmul.f32 %v1856_v56, %v2098_v14  ;;  %v466_v59 = vadd.f32 %v462_v55, %v408_v53  ;;  %v463_v60 = vmul.f32 %v459_v54, %v407_v47  ;;  %v499_v19 = vpack.c.bf16 %v2123_v11, %v2125_v12 }
 0x588   :  { %v497_v6 = vpack.c.bf16 %v466_v59, %v465_v58  ;;  %v464_v9 = vmul.f32 %v460_v57, %v407_v47  ;;  %v467_v13 = vadd.f32 %v463_v60, %v408_v53  ;;  %v1494_v47 = vld [vmem:[%s2305_s3 + $0x1b] ss:$8 sm:$0x7] }
 0x589   :  { %v539_v49 = vrot.slane %v1494_v47, %v538_v46  ;;  %v543_v51 = vrot.slane %v1494_v47, %v542_v48 }
 0x58a   :  { %712 = vmatmul.mubr.bf16.vlgmr.msra.gmra.mrb[4].mxu0 %v497_v6  ;;  %1670 = vmatprep.mubr.bf16.mxu1 %v497_v6  ;;  %v468_v14 = vadd.f32 %v464_v9, %v408_v53 }
 0x58b   :  { %960 = vmatpush1.bf16.msra.mxu0 %v1793_v5  ;;  %721 = vmatprep.mubr.bf16.mxu0 %v1953_v3 }
 0x58c   :  { %961 = vmatprep.subr.bf16.mxu0 %v1798_v7  ;;  %v498_v16 = vpack.c.bf16 %v468_v14, %v467_v13 }
 0x58e   :  { %1671 = vmatmul.mubr.bf16.vlgmr.msra.gmra.mrb[4].mxu1 %v498_v16 }
 0x58f   :  { %962 = vmatpush1.bf16.msra.mxu0 %v1796_v15  ;;  %1675 = vmatpush3.bf16.msra.mxu1 %v1799_v8  ;;  %v1820_v8 = vld [vmem:[#allocation2 + $0x210] ss:$36 sps:$4 sm:$0xff]  }
 0x590   :  { %963 = vmatprep.subr.bf16.mxu0 %v1802_v17  ;;  %1676 = vmatprep.subr.bf16.mxu1 %v1803_v18 }
 0x591   :  { %1690 = vmatprep.mubr.bf16.mxu1 %v499_v19 }
 0x592   :  { %722 = vmatmul.mubr.bf16.gmra.mrb[8].mxu0 %v498_v16 }
 0x593   :  { %964 = vmatpush1.bf16.msra.mxu0 %v1800_v20  ;;  %1677 = vmatpush3.bf16.msra.mxu1 %v1803_v18 }
 0x594   :  { %965 = vmatprep.subr.bf16.mxu0 %v1806_v21  ;;  %1678 = vmatprep.subr.bf16.mxu1 %v1807_v22 }
 0x595   :  { %991 = vmatprep.mubr.bf16.mxu0 %v1953_v3 }
 0x597   :  { %966 = vmatpush1.bf16.msra.mxu0 %v1804_v23  ;;  %1679 = vmatpush3.bf16.msra.mxu1 %v1807_v22 }
 0x598   :  { %967 = vmatprep.subr.bf16.mxu0 %v1810_v24  ;;  %1680 = vmatprep.subr.bf16.mxu1 %v1811_v25 }
 0x59b   :  { %968 = vmatpush1.bf16.msra.mxu0 %v1808_v26  ;;  %1681 = vmatpush3.bf16.msra.mxu1 %v1811_v25 }
 0x59c   :  { %969 = vmatprep.subr.bf16.mxu0 %v1814_v27  ;;  %1682 = vmatprep.subr.bf16.mxu1 %v1815_v28 }
 0x59f   :  { %970 = vmatpush1.bf16.msra.mxu0 %v1812_v29  ;;  %1683 = vmatpush3.bf16.msra.mxu1 %v1815_v28 }
 0x5a0   :  { %971 = vmatprep.subr.bf16.mxu0 %v1818_v30  ;;  %1684 = vmatprep.subr.bf16.mxu1 %v1819_v4  ;;  %v546_v30 = vsub.s32 2, %v537_v45 }
 0x5a3   :  { %972 = vmatpush1.bf16.msra.mxu0 %v1816_v32  ;;  %1685 = vmatpush3.bf16.msra.mxu1 %v1819_v4 }
 0x5a4   :  { %973 = vmatprep.subr.bf16.mxu0 %v1822_v2  ;;  %1686 = vmatprep.subr.bf16.mxu1 %v1823_v33 }
 0x5a7   :  { %974 = vmatpush1.bf16.msra.mxu0 %v1820_v8  ;;  %1687 = vmatpush3.bf16.msra.mxu1 %v1823_v33 }
 0x5a8   :  { %1688 = vmatprep.subr.bf16.mxu1 %v1824_v34 }
 0x5aa   :  { %992 = vmatmul.mubr.bf16.vlgmr.msra.gmra.mrb[4].mxu0 %v499_v19 }
 0x5ab   :  { %1689 = vmatpush3.bf16.msra.mxu1 %v1824_v34  ;;  %1001 = vmatprep.mubr.bf16.mxu0 %v1953_v3  ;;  %v1519_v3 = vld [vmem:[%s2305_s3 + $0x1c] ss:$8 sm:$0x7]  ;;  %v547_v34 = vrot.slane %v1494_v47, %v546_v30 }
 0x5ac   :  { %v819_v50 = vrot.slane %v1519_v3, %v538_v46  ;;  %v823_v52 = vrot.slane %v1519_v3, %v542_v48  ;;  %v827_v32 = vrot.slane %v1519_v3, %v546_v30 }
 0x5ae   :  { %1691 = vmatmul.mubr.bf16.vlgmr.msra.gmra.mrb[8].mxu1 %v500_v40  ;;  %v1714_v53 = vadd.f32 %v819_v50, %v539_v49  ;;  %v1716_v55 = vadd.f32 %v823_v52, %v543_v51 }
 0x5b2   :  { %1002 = vmatmul.mubr.bf16.gmra.mrb[8].mxu0 %v500_v40 }
 0x661   :  { %v2144_v41 = vpop.f32.mrb[4].mxu1 }
 0x662   :  { %v2146_v42 = vpop.f32.mrb[5].mxu1 }
 0x663   :  { %v2148_v43 = vpop.f32.mrb[6].mxu1  ;;  %v767_v49 = vadd.f32 %v2146_v42, %v547_v34  ;;  %v775_v42 = vadd.f32 %v2144_v41, %v547_v34 }
 0x664   :  { %v2150_v44 = vpop.f32.mrb[7].mxu1 }
 0x665   :  { %v770_v3 = vadd.f32 %v2150_v44, %v547_v34 }
 0x67d   :  { %v993_v54 = vpop.f32.mrb[4].mxu0 }
 0x67e   :  { %v1715_v56 = vadd.f32 %v1714_v53, %v993_v54  ;;  %v995_v57 = vpop.f32.mrb[5].mxu0 }
 0x67f   :  { %v997_v0 = vpop.f32.mrb[6].mxu0  ;;  %v1717_v61 = vadd.f32 %v1716_v55, %v995_v57 }
 0x680   :  { %v1544_v58 = vmul.f32 -1.442695, %v1715_v56  ;;  %v1719_v59 = vadd.f32 %v1714_v53, %v997_v0  ;;  %v999_v60 = vpop.f32.mrb[7].mxu0 }
 0x681   :  { %v2159_v62 = vpop.f32.mrb[8].mxu1  ;;  %v1721_v6 = vadd.f32 %v1716_v55, %v999_v60  ;;  %v1548_v10 = vmul.f32 -1.442695, %v1717_v61  ;;  %v778_v61 = vadd.f32 %v2148_v43, %v547_v34 }
 0x682   :  { %1857 = vpow2.f32 %v1544_v58  ;;  %v1545_v63 = vmul.f32 -1.442695, %v1719_v59  ;;  %v1046_v5 = vpop.f32.mrb[9].mxu1  ;;  %v1055_v56 = vadd.f32 %v2159_v62, %v827_v32 }
 0x683   :  { %v2161_v7 = vpop.f32.mrb[10].mxu1  ;;  %v1549_v16 = vmul.f32 -1.442695, %v1721_v6  ;;  %v1047_v40 = vadd.f32 %v1046_v5, %v827_v32 }
 0x684   :  { %1859 = vpow2.f32 %v1545_v63  ;;  %v1049_v9 = vpop.f32.mrb[11].mxu1  ;;  %v1058_v58 = vadd.f32 %v2161_v7, %v827_v32 }
 0x685   :  { %v1003_v13 = vpop.f32.mrb[8].mxu0  ;;  %1861 = vpow2.f32 %v1548_v10  ;;  %v1050_v50 = vadd.f32 %v1049_v9, %v827_v32 }
 0x686   :  { %v1723_v14 = vadd.f32 %v1714_v53, %v1003_v13  ;;  %v1005_v15 = vpop.f32.mrb[9].mxu0 }
 0x687   :  { %v1007_v17 = vpop.f32.mrb[10].mxu0  ;;  %v1725_v19 = vadd.f32 %v1716_v55, %v1005_v15 }
 0x688   :  { %v1546_v18 = vmul.f32 -1.442695, %v1723_v14  ;;  %v1727_v20 = vadd.f32 %v1714_v53, %v1007_v17  ;;  %v1009_v21 = vpop.f32.mrb[11].mxu0 }
 0x689   :  { %v1729_v23 = vadd.f32 %v1716_v55, %v1009_v21  ;;  %v1550_v25 = vmul.f32 -1.442695, %v1725_v19 }
 0x68a   :  { %1863 = vpow2.f32 %v1546_v18  ;;  %v1547_v22 = vmul.f32 -1.442695, %v1727_v20 }
 0x68b   :  { %1865 = vpow2.f32 %v1549_v16  ;;  %v1551_v29 = vmul.f32 -1.442695, %v1729_v23 }
 0x68c   :  { %v1858_v24 = vpop.eup %1857  ;;  %1867 = vpow2.f32 %v1547_v22 }
 0x68d   :  { %v1077_v26 = vadd.f32 1.0, %v1858_v24 }
 0x68e   :  { %v1860_v27 = vpop.eup %1859 }
 0x68f   :  { %1869 = vrcp.f32 %v1077_v26  ;;  %v1078_v28 = vadd.f32 1.0, %v1860_v27  ;;  %v1862_v4 = vpop.eup %1861 }
 0x690   :  { %1871 = vpow2.f32 %v1550_v25  ;;  %v1105_v35 = vadd.f32 1.0, %v1862_v4 }
 0x691   :  { %1873 = vrcp.f32 %v1078_v28 }
 0x692   :  { %1875 = vpow2.f32 %v1551_v29 }
 0x694   :  { %v1864_v31 = vpop.eup %1863 }
 0x695   :  { %v1866_v2 = vpop.eup %1865  ;;  %v1079_v33 = vadd.f32 1.0, %v1864_v31 }
 0x696   :  { %v1868_v8 = vpop.eup %1867  ;;  %v1106_v37 = vadd.f32 1.0, %v1866_v2 }
 0x697   :  { %1877 = vrcp.f32 %v1079_v33  ;;  %v1080_v36 = vadd.f32 1.0, %v1868_v8 }
 0x699   :  { %v1870_v46 = vpop.eup %1869  ;;  %1879 = vrcp.f32 %v1080_v36 }
 0x69a   :  { %v1872_v48 = vpop.eup %1871  ;;  %1881 = vrcp.f32 %v1105_v35  ;;  %v1117_v45 = vmul.f32 %v1870_v46, %v1047_v40 }
 0x69b   :  { %v1874_v51 = vpop.eup %1873  ;;  %1883 = vrcp.f32 %v1106_v37  ;;  %v1107_v55 = vadd.f32 1.0, %v1872_v48 }
 0x69c   :  { %v1121_v52 = vadd.f32 %v1117_v45, %v767_v49  ;;  %v1118_v53 = vmul.f32 %v1874_v51, %v1050_v50  ;;  %v1876_v47 = vpop.eup %1875 }
 0x69d   :  { %v1108_v57 = vadd.f32 1.0, %v1876_v47  ;;  %v1826_v47 = vld [vmem:[#allocation2 + $0x50] ss:$36 sps:$4 sm:$0xff]  }
 0x69e   :  { %1885 = vtanh.f32 %v1121_v52  ;;  %v1122_v54 = vadd.f32 %v1118_v53, %v770_v3  ;;  %v1825_v53 = vld [vmem:[#allocation2 + $0x8] ss:$36 sps:$4 sm:$0xff]  }
 0x69f   :  { %1694 = vmatprep.subr.bf16.mxu0 %v1825_v53 }
 0x6a0   :  { %1887 = vtanh.f32 %v1122_v54  ;;  %1695 = vmatpush3.bf16.msra.mxu0 %v1825_v53  ;;  %v1827_v54 = vld [vmem:[#allocation2 + $0x98] ss:$36 sps:$4 sm:$0xff]  }
 0x6a1   :  { %v1878_v0 = vpop.eup %1877  ;;  %1889 = vrcp.f32 %v1107_v55  ;;  %1696 = vmatprep.subr.bf16.mxu0 %v1826_v47  ;;  %v1828_v55 = vld [vmem:[#allocation2 + $0xe0] ss:$36 sps:$4 sm:$0xff]  }
 0x6a2   :  { %v1119_v59 = vmul.f32 %v1878_v0, %v1055_v56  ;;  %1891 = vrcp.f32 %v1108_v57  ;;  %v1829_v56 = vld [vmem:[#allocation2 + $0x128] ss:$36 sps:$4 sm:$0xff]   ;;  %v1830_v57 = vld [vmem:[#allocation2 + $0x170] ss:$36 sps:$4 sm:$0xff]   ;;  %v1831_v0 = vld [vmem:[#allocation2 + $0x1b8] ss:$36 sps:$4 sm:$0xff]  }
 0x6a3   :  { %v1880_v60 = vpop.eup %1879 }
 0x6a4   :  { %v1882_v44 = vpop.eup %1881  ;;  %v1120_v63 = vmul.f32 %v1880_v60, %v1058_v58  ;;  %v1123_v5 = vadd.f32 %v1119_v59, %v775_v42  ;;  %1697 = vmatpush3.bf16.msra.mxu0 %v1826_v47  ;;  %v1832_v42 = vld [vmem:[#allocation2 + $0x200] ss:$36 sps:$4 sm:$0xff]  }
 0x6a5   :  { %v1884_v6 = vpop.eup %1883  ;;  %v1129_v62 = vsub.f32 1.0, %v1882_v44  ;;  %v1137_v41 = vmul.f32 %v1882_v44, %v2125_v12  ;;  %1698 = vmatprep.subr.bf16.mxu0 %v1827_v54 }
 0x6a6   :  { %1893 = vtanh.f32 %v1123_v5  ;;  %v1124_v9 = vadd.f32 %v1120_v63, %v778_v61  ;;  %v1130_v14 = vsub.f32 1.0, %v1884_v6  ;;  %v1138_v17 = vmul.f32 %v1884_v6, %v2123_v11 }
 0x6a8   :  { %v1886_v10 = vpop.eup %1885  ;;  %1895 = vtanh.f32 %v1124_v9  ;;  %1699 = vmatpush3.bf16.msra.mxu0 %v1827_v54 }
 0x6a9   :  { %v1133_v13 = vmul.f32 %v1886_v10, %v1129_v62  ;;  %1700 = vmatprep.subr.bf16.mxu0 %v1828_v55 }
 0x6aa   :  { %v1888_v7 = vpop.eup %1887 }
 0x6ab   :  { %v1141_v15 = vadd.f32 %v1137_v41, %v1133_v13  ;;  %v1134_v16 = vmul.f32 %v1888_v7, %v1130_v14  ;;  %v1890_v18 = vpop.eup %1889  ;;  %v1145_v7 = vld [vmem:[%s2305_s3 + $0x18] ss:$0 sm:$0xff] }
 0x6ac   :  { %v1892_v20 = vpop.eup %1891  ;;  %v1131_v12 = vsub.f32 1.0, %v1890_v18  ;;  %v1139_v11 = vmul.f32 %v1890_v18, %v2137_v38  ;;  %1701 = vmatpush3.bf16.msra.mxu0 %v1828_v55  ;;  %v1146_v18 = vld [vmem:[%s2305_s3 + $0x19] ss:$0 sm:$0xff] }
 0x6ad   :  { %v2173_v43 = vsel %vm35_vm1, %v1141_v15, 0.0  ;;  %v1142_v19 = vadd.f32 %v1138_v17, %v1134_v16  ;;  %v1132_v24 = vsub.f32 1.0, %v1892_v20  ;;  %v1140_v28 = vmul.f32 %v1892_v20, %v2139_v39  ;;  %1702 = vmatprep.subr.bf16.mxu0 %v1829_v56 }
 0x6ae   :  { %1151 = vadd.xlane.f32.xlu1 %v2173_v43 }
 0x6af   :  { %v2178_v21 = vsel %vm35_vm1, %v1142_v19, 0.0 }
 0x6b0   :  { %v1894_v22 = vpop.eup %1893  ;;  %1153 = vadd.xlane.f32.xlu0 %v2178_v21  ;;  %1703 = vmatpush3.bf16.msra.mxu0 %v1829_v56 }
 0x6b1   :  { %v1135_v23 = vmul.f32 %v1894_v22, %v1131_v12  ;;  %1704 = vmatprep.subr.bf16.mxu0 %v1830_v57 }
 0x6b2   :  { %v1896_v25 = vpop.eup %1895 }
 0x6b3   :  { %v1143_v26 = vadd.f32 %v1139_v11, %v1135_v23  ;;  %v1136_v27 = vmul.f32 %v1896_v25, %v1132_v24 }
 0x6b4   :  { %1705 = vmatpush3.bf16.msra.mxu0 %v1830_v57 }
 0x6b5   :  { %v2185_v29 = vsel %vm35_vm1, %v1143_v26, 0.0  ;;  %v1144_v30 = vadd.f32 %v1140_v28, %v1136_v27  ;;  %1706 = vmatprep.subr.bf16.mxu0 %v1831_v0 }
 0x6b6   :  { %1155 = vadd.xlane.f32.xlu1 %v2185_v29 }
 0x6b7   :  { %v2190_v4 = vsel %vm35_vm1, %v1144_v30, 0.0 }
 0x6b8   :  { %1707 = vmatpush3.bf16.msra.mxu0 %v1831_v0 }
 0x6b9   :  { %1708 = vmatprep.subr.bf16.mxu0 %v1832_v42 }
 0x6ba   :  { %1157 = vadd.xlane.f32.xlu1 %v2190_v4 }
 0x6bc   :  { %1709 = vmatpush3.bf16.msra.mxu0 %v1832_v42 }
 0x73b   :  { %v1152_v38 = vpop.xlane.xlu1 %1151 }
 0x73c   :  { %v1159_v31 = vmul.f32 0.015625, %v1152_v38 }
 0x73d   :  { %v1154_v32 = vpop.xlane.xlu0 %1153 }
 0x73e   :  { %v1163_v2 = vsub.f32 %v2173_v43, %v1159_v31  ;;  %v1160_v33 = vmul.f32 0.015625, %v1154_v32  ;;  %v1225_v31 = vld [vmem:[%s2305_s3 + $0x1a] ss:$0 sm:$0xff] }
 0x740   :  { %v1164_v39 = vsub.f32 %v2178_v21, %v1160_v33  ;;  %v1167_v8 = vsel %vm35_vm1, %v1163_v2, 0.0  ;;  %v1921_v33 = vld [vmem:[%s2302_s0] sm:$0xff] }
 0x741   :  { %v1171_v34 = vmul.f32 %v1167_v8, %v1167_v8  ;;  %vm1323_vm4 = vcmp.gt.f32.partialorder %v1921_v33, 0.0 }
 0x742   :  { %v1168_v35 = vsel %vm35_vm1, %v1164_v39, 0.0 }
 0x743   :  { %v1156_v36 = vpop.xlane.xlu1 %1155  ;;  %1175 = vadd.xlane.f32.xlu1 %v1171_v34  ;;  %v1172_v40 = vmul.f32 %v1168_v35, %v1168_v35 }
 0x744   :  { %v1161_v37 = vmul.f32 0.015625, %v1156_v36  ;;  %v1922_v36 = vld [vmem:[%s2302_s0 + $0x10] sm:$0xff] }
 0x745   :  { %vm1325_vm6 = vcmp.gt.f32.partialorder %v1922_v36, 0.0 }
 0x746   :  { %v1165_v46 = vsub.f32 %v2185_v29, %v1161_v37 }
 0x747   :  { %1177 = vadd.xlane.f32.xlu1 %v1172_v40  ;;  %v1158_v48 = vpop.xlane.xlu1 %1157  ;;  %v1923_v40 = vld [vmem:[%s2302_s0 + $0x8] sm:$0xff] }
 0x748   :  { %v1162_v49 = vmul.f32 0.015625, %v1158_v48  ;;  %v1169_v45 = vsel %vm35_vm1, %v1165_v46, 0.0  ;;  %vm1324_vm7 = vcmp.gt.f32.partialorder %v1923_v40, 0.0 }
 0x749   :  { %v1173_v50 = vmul.f32 %v1169_v45, %v1169_v45 }
 0x74a   :  { %v1166_v51 = vsub.f32 %v2190_v4, %v1162_v49 }
 0x74b   :  { %1179 = vadd.xlane.f32.xlu0 %v1173_v50 }
 0x74c   :  { %v1170_v3 = vsel %vm35_vm1, %v1166_v51, 0.0  ;;  %vm1451_vm1 = vcmp.eq.s32.totalorder %v1992_v1, 64 }
 0x74d   :  { %v1174_v52 = vmul.f32 %v1170_v3, %v1170_v3 }
 0x74f   :  { %1181 = vadd.xlane.f32.xlu1 %v1174_v52 }
 0x7d0   :  { %v1176_v58 = vpop.xlane.xlu1 %1175 }
 0x7d1   :  { %v1183_v59 = vmul.f32 0.015625, %v1176_v58 }
 0x7d3   :  { %v1187_v60 = vadd.f32 1e-05, %v1183_v59 }
 0x7d4   :  { %v1178_v44 = vpop.xlane.xlu1 %1177 }
 0x7d5   :  { %1897 = vrsqrt.f32 %v1187_v60  ;;  %v1184_v61 = vmul.f32 0.015625, %v1178_v44 }
 0x7d7   :  { %v1188_v63 = vadd.f32 1e-05, %v1184_v61 }
 0x7d8   :  { %v1180_v5 = vpop.xlane.xlu0 %1179 }
 0x7d9   :  { %1899 = vrsqrt.f32 %v1188_v63  ;;  %v1185_v6 = vmul.f32 0.015625, %v1180_v5 }
 0x7db   :  { %v1189_v9 = vadd.f32 1e-05, %v1185_v6 }
 0x7dc   :  { %v1182_v62 = vpop.xlane.xlu1 %1181 }
 0x7dd   :  { %1901 = vrsqrt.f32 %v1189_v9  ;;  %v1186_v10 = vmul.f32 0.015625, %v1182_v62 }
 0x7df   :  { %v1898_v13 = vpop.eup %1897  ;;  %v1190_v41 = vadd.f32 1e-05, %v1186_v10 }
 0x7e0   :  { %v1195_v14 = vmul.f32 %v1898_v13, %v1167_v8 }
 0x7e1   :  { %1903 = vrsqrt.f32 %v1190_v41 }
 0x7e2   :  { %v1199_v17 = vmul.f32 %v1195_v14, %v1145_v7 }
 0x7e3   :  { %v1900_v15 = vpop.eup %1899 }
 0x7e4   :  { %v1196_v16 = vmul.f32 %v1900_v15, %v1168_v35  ;;  %v1203_v22 = vadd.f32 %v1199_v17, %v1146_v18 }
 0x7e6   :  { %v1200_v19 = vmul.f32 %v1196_v16, %v1145_v7 }
 0x7e7   :  { %v1902_v20 = vpop.eup %1901 }
 0x7e8   :  { %v1197_v12 = vmul.f32 %v1902_v20, %v1169_v45  ;;  %v1204_v23 = vadd.f32 %v1200_v19, %v1146_v18  ;;  %v1924_v45 = vld [vmem:[%s2302_s0 + $0x18] sm:$0xff] }
 0x7e9   :  { %vm1326_vm8 = vcmp.gt.f32.partialorder %v1924_v45, 0.0 }
 0x7ea   :  { %v1207_v11 = vpack.c.bf16 %v1204_v23, %v1203_v22  ;;  %v1201_v26 = vmul.f32 %v1197_v12, %v1145_v7 }
 0x7eb   :  { %v1904_v24 = vpop.eup %1903 }
 0x7ec   :  { %v1198_v25 = vmul.f32 %v1904_v24, %v1170_v3  ;;  %1710 = vmatprep.mubr.bf16.mxu0 %v1207_v11  ;;  %v1205_v28 = vadd.f32 %v1201_v26, %v1146_v18 }
 0x7ee   :  { %v1202_v27 = vmul.f32 %v1198_v25, %v1145_v7 }
 0x7f0   :  { %v1206_v30 = vadd.f32 %v1202_v27, %v1146_v18 }
 0x7f2   :  { %v1208_v38 = vpack.c.bf16 %v1206_v30, %v1205_v28 }
 0x7f4   :  { %1711 = vmatmul.mubr.bf16.vlgmr.msra.gmra.mrb[12].mxu0 %v1208_v38 }
 0x8c7   :  { %v1712_v32 = vpop.f32.mrb[12].mxu0 }
 0x8c8   :  { %v1308_v2 = vpop.f32.mrb[13].mxu0  ;;  %v1317_v39 = vadd.f32 %v1712_v32, %v1225_v31 }
 0x8c9   :  { %v1309_v8 = vadd.f32 %v1308_v2, %v1225_v31  ;;  %v1713_v34 = vpop.f32.mrb[14].mxu0 }
 0x8ca   :  { %v1311_v37 = vpop.f32.mrb[15].mxu0  ;;  %v1320_v48 = vadd.f32 %v1713_v34, %v1225_v31  ;;  %v1329_v51 = vsel %vm1325_vm6, %v1317_v39, -1e+10 }
 0x8cb   :  { %v1327_v46 = vsel %vm1323_vm4, %v1309_v8, -1e+10  ;;  %v1312_v49 = vadd.f32 %v1311_v37, %v1225_v31  ;;  %v1333_v47 = vsel %vm2219_vm5, %v1329_v51, -1e+30 }
 0x8cc   :  { %v1331_v50 = vsel %vm2219_vm5, %v1327_v46, -1e+30  ;;  %v1330_v53 = vsel %vm1326_vm8, %v1320_v48, -1e+10 }
 0x8cd   :  { %v1328_v3 = vsel %vm1324_vm7, %v1312_v49, -1e+10  ;;  %1335 = vmax.xlane.f32.xlu0 %v1331_v50  ;;  %v1334_v54 = vsel %vm2219_vm5, %v1330_v53, -1e+30 }
 0x8ce   :  { %v1332_v52 = vsel %vm2219_vm5, %v1328_v3, -1e+30 }
 0x8cf   :  { %1337 = vmax.xlane.f32.xlu1 %v1332_v52 }
 0x8d1   :  { %1339 = vmax.xlane.f32.xlu0 %v1333_v47 }
 0x8d3   :  { %1341 = vmax.xlane.f32.xlu1 %v1334_v54 }
 0x95a   :  { %v2240_v55 = vpop.xlane.xlu0 %1335 }
 0x95b   :  { %vm1375_vm9 = vcmp.ge.f32.partialorder %v1331_v50, %v2240_v55  ;;  %v1343_v59 = vsub.f32 %v1331_v50, %v2240_v55 }
 0x95c   :  { %v2243_v56 = vpop.xlane.xlu1 %1337  ;;  %v1379_v57 = vsel %vm1375_vm9, %v1992_v1, 128 }
 0x95d   :  { %v1384_v0 = vshra.s32 %v1379_v57, 16  ;;  %vm1376_vm10 = vcmp.ge.f32.partialorder %v1332_v52, %v2243_v56  ;;  %v1344_v5 = vsub.f32 %v1332_v52, %v2243_v56  ;;  %v1347_v41 = vmul.f32 1.442695, %v1343_v59 }
 0x95e   :  { %v2247_v42 = vpop.xlane.xlu0 %1339  ;;  %v1380_v58 = vsel %vm1376_vm10, %v1992_v1, 128  ;;  %v1383_v23 = vand.u32 65535, %v1379_v57 }
 0x95f   :  { %v1345_v60 = vsub.f32 %v1333_v47, %v2247_v42  ;;  %v1386_v44 = vcvt.s32.f32 %v1384_v0  ;;  %v1398_v63 = vshra.s32 %v1380_v58, 16  ;;  %vm1377_vm11 = vcmp.ge.f32.partialorder %v1333_v47, %v2247_v42 }
 0x960   :  { %v2252_v61 = vpop.xlane.xlu1 %1341  ;;  %v1381_v62 = vsel %vm1377_vm11, %v1992_v1, 128  ;;  %v1349_v17 = vmul.f32 1.442695, %v1344_v5  ;;  %v1397_v11 = vand.u32 65535, %v1380_v58  ;;  %v1385_v25 = vcvt.s32.f32 %v1383_v23 }
 0x961   :  { %v1351_v6 = vmul.f32 1.442695, %v1345_v60  ;;  %v1346_v9 = vsub.f32 %v1334_v54, %v2252_v61  ;;  %1387 = vmin.xlane.f32.xlu0 %v1386_v44  ;;  %v1400_v10 = vcvt.s32.f32 %v1398_v63  ;;  %v1412_v13 = vshra.s32 %v1381_v62, 16 }
 0x962   :  { %vm1378_vm12 = vcmp.ge.f32.partialorder %v1334_v54, %v2252_v61  ;;  %v1411_v26 = vand.u32 65535, %v1381_v62  ;;  %v1399_v30 = vcvt.s32.f32 %v1397_v11 }
 0x963   :  { %1905 = vpow2.f32 %v1351_v6  ;;  %v1353_v14 = vmul.f32 1.442695, %v1346_v9  ;;  %v1382_v7 = vsel %vm1378_vm12, %v1992_v1, 128  ;;  %1401 = vmin.xlane.f32.xlu1 %v1400_v10  ;;  %v1414_v15 = vcvt.s32.f32 %v1412_v13 }
 0x964   :  { %v1426_v16 = vshra.s32 %v1382_v7, 16  ;;  %v1425_v38 = vand.u32 65535, %v1382_v7  ;;  %v1413_v2 = vcvt.s32.f32 %v1411_v26 }
 0x965   :  { %1907 = vpow2.f32 %v1353_v14  ;;  %1415 = vmin.xlane.f32.xlu0 %v1414_v15 }
 0x966   :  { %v1428_v18 = vcvt.s32.f32 %v1426_v16  ;;  %1909 = vpow2.f32 %v1347_v41  ;;  %v1427_v8 = vcvt.s32.f32 %v1425_v38 }
 0x967   :  { %1911 = vpow2.f32 %v1349_v17 }
 0x968   :  { %1429 = vmin.xlane.f32.xlu1 %v1428_v18 }
 0x96d   :  { %v1906_v19 = vpop.eup %1905 }
 0x96e   :  { %1359 = vadd.xlane.f32.xlu0 %v1906_v19 }
 0x96f   :  { %v1908_v20 = vpop.eup %1907 }
 0x970   :  { %1361 = vadd.xlane.f32.xlu1 %v1908_v20  ;;  %v1910_v12 = vpop.eup %1909 }
 0x971   :  { %v1912_v22 = vpop.eup %1911 }
 0x972   :  { %1355 = vadd.xlane.f32.xlu0 %v1910_v12 }
 0x974   :  { %1357 = vadd.xlane.f32.xlu1 %v1912_v22 }
 0x9ee   :  { %v1388_v24 = vpop.xlane.xlu0 %1387 }
 0x9ef   :  { %vm1389_vm13 = vcmp.eq.f32.partialorder %v1386_v44, %v1388_v24  ;;  %v1394_v48 = vcvt.f32.s32 %v1388_v24 }
 0x9f0   :  { %v1390_v27 = vsel %vm1389_vm13, %v1385_v25, inf  ;;  %v1402_v28 = vpop.xlane.xlu1 %1401 }
 0x9f1   :  { %1391 = vmin.xlane.f32.xlu0 %v1390_v27  ;;  %vm1403_vm14 = vcmp.eq.f32.partialorder %v1400_v10, %v1402_v28  ;;  %v1408_v51 = vcvt.f32.s32 %v1402_v28  ;;  %v1395_v52 = vshll.u32 %v1394_v48, 16 }
 0x9f2   :  { %v1416_v31 = vpop.xlane.xlu0 %1415  ;;  %v1404_v32 = vsel %vm1403_vm14, %v1399_v30, inf }
 0x9f3   :  { %1405 = vmin.xlane.f32.xlu1 %v1404_v32  ;;  %vm1417_vm15 = vcmp.eq.f32.partialorder %v1414_v15, %v1416_v31  ;;  %v1422_v57 = vcvt.f32.s32 %v1416_v31  ;;  %v1409_v44 = vshll.u32 %v1408_v51, 16 }
 0x9f4   :  { %v1418_v39 = vsel %vm1417_vm15, %v1413_v2, inf }
 0x9f5   :  { %v1430_v33 = vpop.xlane.xlu1 %1429  ;;  %1419 = vmin.xlane.f32.xlu0 %v1418_v39  ;;  %v1423_v13 = vshll.u32 %v1422_v57, 16 }
 0x9f6   :  { %vm1431_vm0 = vcmp.eq.f32.partialorder %v1428_v18, %v1430_v33  ;;  %v1436_v63 = vcvt.f32.s32 %v1430_v33 }
 0x9f7   :  { %v1432_v34 = vsel %vm1431_vm0, %v1427_v8, inf }
 0x9f8   :  { %1433 = vmin.xlane.f32.xlu1 %v1432_v34  ;;  %v1437_v18 = vshll.u32 %v1436_v63, 16 }
 0x9fb   :  { %v1360_v35 = vpop.xlane.xlu0 %1359 }
 0x9fd   :  { %v1362_v36 = vpop.xlane.xlu1 %1361 }
 0x9ff   :  { %v1356_v37 = vpop.xlane.xlu0 %1355 }
 0xa00   :  { %1913 = vlog2.f32 %v1356_v37 }
 0xa01   :  { %v1358_v40 = vpop.xlane.xlu1 %1357 }
 0xa02   :  { %1915 = vlog2.f32 %v1358_v40 }
 0xa03   :  { %1917 = vlog2.f32 %v1360_v35 }
 0xa04   :  { %1919 = vlog2.f32 %v1362_v36 }
 0xa0a   :  { %v1914_v46 = vpop.eup %1913 }
 0xa0b   :  { %v1364_v45 = vmul.f32 0.6931472, %v1914_v46 }
 0xa0c   :  { %v1916_v49 = vpop.eup %1915 }
 0xa0d   :  { %v1918_v50 = vpop.eup %1917  ;;  %v1366_v53 = vmul.f32 0.6931472, %v1916_v49  ;;  %v1371_v58 = vadd.f32 %v1364_v45, %v2240_v55 }
 0xa0e   :  { %v1920_v54 = vpop.eup %1919  ;;  %v1368_v0 = vmul.f32 0.6931472, %v1918_v50 }
 0xa0f   :  { %v1370_v6 = vmul.f32 0.6931472, %v1920_v54  ;;  %v1372_v9 = vadd.f32 %v1366_v53, %v2243_v56  ;;  %v1447_v15 = vsub.f32 %v2240_v55, %v1371_v58 }
 0xa10   :  { %v1373_v7 = vadd.f32 %v1368_v0, %v2247_v42 }
 0xa11   :  { %v1374_v22 = vadd.f32 %v1370_v6, %v2252_v61  ;;  %v1448_v23 = vsub.f32 %v2243_v56, %v1372_v9  ;;  %v1461_v28 = vsel %vm1460_vm2, %v1447_v15, 0.0 }
 0xa12   :  { %v1449_v27 = vsub.f32 %v2247_v42, %v1373_v7 }
 0xa13   :  { %v1450_v2 = vsub.f32 %v2252_v61, %v1374_v22 }
 0xa14   :  { %v1463_v34 = vsel %vm1460_vm2, %v1449_v27, 0.0 }
 0xa15   :  { %v1464_v36 = vsel %vm1460_vm2, %v1450_v2, 0.0 }
 0xa7e   :  { %v1392_v3 = vpop.xlane.xlu0 %1391 }
 0xa7f   :  { %v1393_v47 = vcvt.f32.s32 %v1392_v3 }
 0xa80   :  { %v1406_v60 = vpop.xlane.xlu1 %1405 }
 0xa81   :  { %v1396_v59 = vadd.s32 %v1395_v52, %v1393_v47  ;;  %v1407_v5 = vcvt.f32.s32 %v1406_v60 }
 0xa82   :  { %v1420_v10 = vpop.xlane.xlu0 %1419 }
 0xa83   :  { %v1560_v62 = vadd.s32 4294967264, %v1396_v59  ;;  %v1410_v41 = vadd.s32 %v1409_v44, %v1407_v5  ;;  %v1421_v14 = vcvt.f32.s32 %v1420_v10 }
 0xa85   :  { %v1443_v16 = vcvt.s32.f32 %v1560_v62  ;;  %v1434_v17 = vpop.xlane.xlu1 %1433  ;;  %v1561_v19 = vadd.s32 4294967264, %v1410_v41  ;;  %v1424_v20 = vadd.s32 %v1423_v13, %v1421_v14 }
 0xa86   :  { %v1435_v12 = vcvt.f32.s32 %v1434_v17 }
 0xa87   :  { %v1452_v11 = vsel %vm1451_vm1, %v1443_v16, 0.0  ;;  %v1444_v25 = vcvt.s32.f32 %v1561_v19  ;;  %v1562_v26 = vadd.s32 4294967264, %v1424_v20 }
 0xa88   :  { %v1456_v24 = vadd.f32 %v1452_v11, %v2173_v43  ;;  %v1438_v55 = vadd.s32 %v1437_v18, %v1435_v12  ;;  %v1462_v43 = vsel %vm1460_vm2, %v1448_v23, 0.0 }
 0xa89   :  { %v1453_v38 = vsel %vm1451_vm1, %v1444_v25, 0.0  ;;  %v1445_v31 = vcvt.s32.f32 %v1562_v26 }
 0xa8a   :  { %v1465_v30 = vadd.f32 %v1461_v28, %v1456_v24  ;;  %v1563_v32 = vadd.s32 4294967264, %v1438_v55  ;;  %v1457_v56 = vadd.f32 %v1453_v38, %v2178_v21 }
 0xa8b   :  { %v1454_v42 = vsel %vm1451_vm1, %v1445_v31, 0.0 }
 0xa8c   :  { %1469 = vst [vmem:[%s2306_s4] sm:$0xff] %v1465_v30  ;;  %v1446_v33 = vcvt.s32.f32 %v1563_v32  ;;  %v1466_v39 = vadd.f32 %v1462_v43, %v1457_v56  ;;  %v1458_v8 = vadd.f32 %v1454_v42, %v2185_v29 }
 0xa8e   :  { %v1455_v21 = vsel %vm1451_vm1, %v1446_v33, 0.0  ;;  %1470 = vst [vmem:[%s2306_s4 + $0x8] sm:$0xff] %v1466_v39  ;;  %v1467_v61 = vadd.f32 %v1463_v34, %v1458_v8 }
 0xa8f   :  { %v1459_v35 = vadd.f32 %v1455_v21, %v2190_v4 }
 0xa90   :  { %1471 = vst [vmem:[%s2306_s4 + $0x10] sm:$0xff] %v1467_v61 }
 0xa91   :  { %v1468_v29 = vadd.f32 %v1464_v36, %v1459_v35 }
 0xa93   :  { %1472 = vst [vmem:[%s2306_s4 + $0x18] sm:$0xff] %v1468_v29 }
 0xa94   :  { %1477 = vsyncpa [#allocation3], 1 }

</bundles_post_ra>
